<compile_context>
chip_gen: v7x
topology: tpu7x:2x2x1
jax: 0.10.0
libtpu: 0.0.40
codegen_flags: <defaults>
</compile_context>

<pallas_src>
import functools

import jax
import jax.numpy as jnp
from jax.experimental import pallas as pl
from jax.experimental.pallas import tpu as pltpu


def _round_up(x, m):
    return ((x + m - 1) // m) * m


def _round_down(x, m):
    return (x // m) * m


def decoder_kernel(z_ref, w1_ref, b1_ref, w2_ref, b2_ref, o_ref, *, apply_sigmoid):
    # ----- linear1 (K = z_dim = 20, <2.5% of FLOPs): f32 inputs, f32 accumulate -----
    h = jnp.dot(z_ref[...], w1_ref[...], preferred_element_type=jnp.float32)
    h = jnp.maximum(h + b1_ref[...], 0.0)                    # (tm, hidden_pad) f32
    # ----- linear2: bf16 MXU inputs, f32 accumulate; f32 bias (+ sigmoid) epilogue -----
    y = jnp.dot(h.astype(jnp.bfloat16), w2_ref[...],
                preferred_element_type=jnp.float32)
    y = y + b2_ref[...]                                      # (tm, output_dim) f32
    if apply_sigmoid:
        y = jax.nn.sigmoid(y)
    o_ref[...] = y.astype(o_ref.dtype)


def decoder_forward(z, w1, b1, w2_bf16, b2, *, tm_max=512,
                    out_dtype=jnp.bfloat16, apply_sigmoid=True):
    """z: (B, z_dim) f32.
       w1: (z_dim, hidden_pad) f32, b1: (1, hidden_pad) f32 (hidden zero-padded to 512),
       w2_bf16: (hidden_pad, output_dim) bf16, b2: (1, output_dim) f32.
       Returns (B, output_dim) in out_dtype (bf16 default; use jnp.float32 for exact
       module dtype parity)."""
    B, z_dim = z.shape
    hidden_pad = w1.shape[1]
    output_dim = w2_bf16.shape[1]

    # ---- batch tile selection: big tiles, but >=2 grid steps when the batch allows ----
    B128 = _round_up(max(B, 1), 128)
    tm = min(tm_max, B128)
    if B128 >= 256:                      # leave work for v7x's second TensorCore
        tm = min(tm, _round_down(B128 // 2, 128))
    tm = max(tm, 128)
    B_pad = _round_up(B, tm)
    if B_pad != B:
        z = jnp.pad(z, ((0, B_pad - B), (0, 0)))

    # Weights/biases use a constant index_map (VMEM-resident); a single buffer is enough.
    resident = dict(pipeline_mode=pl.Buffered(buffer_count=1))

    out = pl.pallas_call(
        functools.partial(decoder_kernel, apply_sigmoid=apply_sigmoid),
        out_shape=jax.ShapeDtypeStruct((B_pad, output_dim), out_dtype),
        grid_spec=pltpu.PrefetchScalarGridSpec(
            num_scalar_prefetch=0,
            grid=(B_pad // tm,),
            in_specs=[
                # z tiles stream with the grid (last dim 20 == full dim -> legal).
                pl.BlockSpec((tm, z_dim), lambda i: (i, 0)),
                pl.BlockSpec((z_dim, hidden_pad), lambda i: (0, 0), **resident),
                pl.BlockSpec((1, hidden_pad), lambda i: (0, 0), **resident),
                pl.BlockSpec((hidden_pad, output_dim), lambda i: (0, 0), **resident),
                pl.BlockSpec((1, output_dim), lambda i: (0, 0), **resident),
            ],
            # Output written directly at 784 lanes (== full last dim): no padded
            # buffer, no post-kernel lane slice.
            out_specs=pl.BlockSpec((tm, output_dim), lambda i: (i, 0)),
        ),
        compiler_params=pltpu.CompilerParams(
            dimension_semantics=("parallel",),   # independent batch tiles (v7x: 2 TCs)
        ),
    )(z, w1, b1, w2_bf16, b2)

    # Only trim batch padding when B is not a tile multiple (tiny; demo-only).
    return out if B_pad == B else out[:B]


def init_decoder_params(key, z_dim, hidden_dim, output_dim):
    """nn.Linear-style U(-1/sqrt(fan_in), 1/sqrt(fan_in)) init. Weights stored (in, out)
    (transposed vs PyTorch). Returns (kernel params, unpadded f32 reference params)."""
    hidden_pad = _round_up(hidden_dim, 128)   # 500 -> 512
    k1, k2, k3, k4 = jax.random.split(key, 4)
    bnd1 = 1.0 / jnp.sqrt(z_dim)
    bnd2 = 1.0 / jnp.sqrt(hidden_dim)
    w1 = jax.random.uniform(k1, (z_dim, hidden_dim), jnp.float32, -bnd1, bnd1)
    b1 = jax.random.uniform(k2, (1, hidden_dim), jnp.float32, -bnd1, bnd1)
    w2 = jax.random.uniform(k3, (hidden_dim, output_dim), jnp.float32, -bnd2, bnd2)
    b2 = jax.random.uniform(k4, (1, output_dim), jnp.float32, -bnd2, bnd2)

    # Zero padding of the hidden dim keeps the math exact: padded hidden units get
    # 0 pre-activation (relu(0)=0) and the matching w2 rows are zero.
    w1_p = jnp.zeros((z_dim, hidden_pad), jnp.float32).at[:, :hidden_dim].set(w1)
    b1_p = jnp.zeros((1, hidden_pad), jnp.float32).at[:, :hidden_dim].set(b1)
    w2_p = jnp.zeros((hidden_pad, output_dim), jnp.float32).at[:hidden_dim, :].set(w2)

    kernel_params = (w1_p, b1_p, w2_p.astype(jnp.bfloat16), b2)
    ref_params = (w1, b1, w2, b2)
    return kernel_params, ref_params


def decoder_reference(z, w1, b1, w2, b2):
    h = jnp.maximum(z @ w1 + b1, 0.0)
    return jax.nn.sigmoid(h @ w2 + b2)


if __name__ == "__main__":
    # Module-consistent shapes: output_dim=784 (MNIST), hidden_dim=500, z_dim=20.
    batch, z_dim, hidden_dim, output_dim = 2, 20, 500, 784

    key = jax.random.PRNGKey(0)
    kz, kp = jax.random.split(key)
    z = jax.random.normal(kz, (batch, z_dim), dtype=jnp.float32)
    (w1_p, b1_p, w2_p, b2_p), (w1, b1, w2, b2) = init_decoder_params(
        kp, z_dim, hidden_dim, output_dim)

    y = decoder_forward(z, w1_p, b1_p, w2_p, b2_p)
    y = jax.block_until_ready(y)

    # Sanity check vs f32 reference (tolerance covers bf16 matmul2 inputs + bf16 output).
    y_ref = decoder_reference(z, w1, b1, w2, b2)
    assert y.shape == (batch, output_dim)
    y_f32 = y.astype(jnp.float32)
    assert jnp.allclose(y_f32, y_ref, atol=2e-2, rtol=2e-2), \
        float(jnp.max(jnp.abs(y_f32 - y_ref)))

    print("KERNEL_OK")
</pallas_src>

<mosaic_0001>
module attributes {stable_mosaic.version = 11 : i64} {
  func.func @decoder_kernel(%arg0: i32, %arg1: memref<128x20xf32, #tpu.memory_space<vmem>>, %arg2: memref<20x512xf32, #tpu.memory_space<vmem>>, %arg3: memref<1x512xf32, #tpu.memory_space<vmem>>, %arg4: memref<512x784xbf16, #tpu.memory_space<vmem>>, %arg5: memref<1x784xf32, #tpu.memory_space<vmem>>, %arg6: memref<128x784xbf16, #tpu.memory_space<vmem>>) attributes {dimension_semantics = [#tpu.dimension_semantics<parallel>], iteration_bounds = array<i64: 1>, scalar_prefetch = 0 : i64, scratch_operands = 0 : i64, tpu.core_type = #tpu.core_type<tc>, window_params = [{transform_indices = @transform_0, window_bounds = array<i64: 128, 20>}, {pipeline_mode = #tpu.pipeline_mode<synchronous>, transform_indices = @transform_1, window_bounds = array<i64: 20, 512>}, {pipeline_mode = #tpu.pipeline_mode<synchronous>, transform_indices = @transform_2, window_bounds = array<i64: 1, 512>}, {pipeline_mode = #tpu.pipeline_mode<synchronous>, transform_indices = @transform_3, window_bounds = array<i64: 512, 784>}, {pipeline_mode = #tpu.pipeline_mode<synchronous>, transform_indices = @transform_4, window_bounds = array<i64: 1, 784>}, {transform_indices = @transform_5, window_bounds = array<i64: 128, 784>}]} {
    %c0 = arith.constant 0 : index
    %c0_0 = arith.constant 0 : index
    %0 = vector.load %arg1[%c0, %c0_0] : memref<128x20xf32, #tpu.memory_space<vmem>>, vector<128x20xf32>
    %c0_1 = arith.constant 0 : index
    %c0_2 = arith.constant 0 : index
    %1 = vector.load %arg2[%c0_1, %c0_2] : memref<20x512xf32, #tpu.memory_space<vmem>>, vector<20x512xf32>
    %cst = arith.constant dense<0.000000e+00> : vector<128x512xf32>
    %2 = tpu.matmul %0, %1, %cst {dimension_numbers = #tpu.dot_dimension_numbers<[1], [0], [0], [1], [0, 0, 1, 1], [], []>} : vector<128x20xf32>, vector<20x512xf32>, vector<128x512xf32> -> vector<128x512xf32>
    %c0_3 = arith.constant 0 : index
    %c0_4 = arith.constant 0 : index
    %3 = vector.load %arg3[%c0_3, %c0_4] : memref<1x512xf32, #tpu.memory_space<vmem>>, vector<1x512xf32>
    %4 = vector.broadcast %3 : vector<1x512xf32> to vector<128x512xf32>
    %5 = arith.addf %2, %4 : vector<128x512xf32>
    %cst_5 = arith.constant 0.000000e+00 : f32
    %6 = vector.broadcast %cst_5 : f32 to vector<128x512xf32>
    %7 = arith.maximumf %5, %6 : vector<128x512xf32>
    %8 = arith.truncf %7 : vector<128x512xf32> to vector<128x512xbf16>
    %c0_6 = arith.constant 0 : index
    %c0_7 = arith.constant 0 : index
    %9 = vector.load %arg4[%c0_6, %c0_7] : memref<512x784xbf16, #tpu.memory_space<vmem>>, vector<512x784xbf16>
    %cst_8 = arith.constant dense<0.000000e+00> : vector<128x784xf32>
    %10 = tpu.matmul %8, %9, %cst_8 {dimension_numbers = #tpu.dot_dimension_numbers<[1], [0], [0], [1], [0, 0, 1, 1], [], []>} : vector<128x512xbf16>, vector<512x784xbf16>, vector<128x784xf32> -> vector<128x784xf32>
    %c0_9 = arith.constant 0 : index
    %c0_10 = arith.constant 0 : index
    %11 = vector.load %arg5[%c0_9, %c0_10] : memref<1x784xf32, #tpu.memory_space<vmem>>, vector<1x784xf32>
    %12 = vector.broadcast %11 : vector<1x784xf32> to vector<128x784xf32>
    %13 = arith.addf %10, %12 : vector<128x784xf32>
    %14 = arith.negf %13 : vector<128x784xf32>
    %15 = math.exp %14 : vector<128x784xf32>
    %cst_11 = arith.constant 1.000000e+00 : f32
    %16 = vector.broadcast %cst_11 : f32 to vector<128x784xf32>
    %17 = arith.addf %16, %15 : vector<128x784xf32>
    %18 = arith.divf %16, %17 : vector<128x784xf32>
    %19 = arith.truncf %18 : vector<128x784xf32> to vector<128x784xbf16>
    %c0_12 = arith.constant 0 : index
    %c0_13 = arith.constant 0 : index
    %20 = vector.load %arg6[%c0_12, %c0_13] : memref<128x784xbf16, #tpu.memory_space<vmem>>, vector<128x784xbf16>
    tpu.vector_store %arg6[%c0_12, %c0_13], %19 {strides = array<i32>} : memref<128x784xbf16, #tpu.memory_space<vmem>>, vector<128x784xbf16>,
    return
  }
  func.func @transform_0(%arg0: i32) -> (i32, i32) {
    %c0_i32 = arith.constant 0 : i32
    %c0_i32_0 = arith.constant 0 : i32
    return %arg0, %c0_i32 : i32, i32
  }
  func.func @transform_1(%arg0: i32) -> (i32, i32) {
    %c0_i32 = arith.constant 0 : i32
    %c0_i32_0 = arith.constant 0 : i32
    %c0_i32_1 = arith.constant 0 : i32
    return %c0_i32, %c0_i32_0 : i32, i32
  }
  func.func @transform_2(%arg0: i32) -> (i32, i32) {
    %c0_i32 = arith.constant 0 : i32
    %c0_i32_0 = arith.constant 0 : i32
    %c0_i32_1 = arith.constant 0 : i32
    return %c0_i32, %c0_i32_0 : i32, i32
  }
  func.func @transform_3(%arg0: i32) -> (i32, i32) {
    %c0_i32 = arith.constant 0 : i32
    %c0_i32_0 = arith.constant 0 : i32
    %c0_i32_1 = arith.constant 0 : i32
    return %c0_i32, %c0_i32_0 : i32, i32
  }
  func.func @transform_4(%arg0: i32) -> (i32, i32) {
    %c0_i32 = arith.constant 0 : i32
    %c0_i32_0 = arith.constant 0 : i32
    %c0_i32_1 = arith.constant 0 : i32
    return %c0_i32, %c0_i32_0 : i32, i32
  }
  func.func @transform_5(%arg0: i32) -> (i32, i32) {
    %c0_i32 = arith.constant 0 : i32
    %c0_i32_0 = arith.constant 0 : i32
    return %arg0, %c0_i32 : i32, i32
  }
}

</mosaic_0001>

<bundles_post_ra>
// kernel: tpu_custom_call.1
= control target key start
LH: loop header
LB: loop body
LE: loop exit
PB: predicated region body
PF: predicated region fallthrough
CT: control target
= control target key end

     0   :  { %v5559_v3 = vmov 0.0   ;;  %vm120_vm0 = vcmask 1043456   ;;  %vm71_vm1 = vcmask 162816   ;;  %vm3895_vm2 = vcmask 125952   ;;  %s7303_s1 = inlined_call_operand.vmem [shape: f32[20,512], index: 1, kind: input, shape index: {}]   ;;  %s7304_s0 = inlined_call_operand.vmem [shape: f32[128,20], index: 0, kind: input, shape index: {}]   ;;  %s7305_s3 = inlined_call_operand.vmem [shape: bf16[512,784], index: 3, kind: input, shape index: {}]   ;;  %s7306_s2 = inlined_call_operand.vmem [shape: f32[1,512], index: 2, kind: input, shape index: {}]   ;;  %s7307_s4 = inlined_call_operand.vmem [shape: f32[1,784], index: 4, kind: input, shape index: {}]   ;;  %s7308_s5 = inlined_call_operand.vmem [shape: bf16[128,784], index: 5, kind: output, shape index: {}]  }
   0x1   :  { %v38_v0 = vld [vmem:[%s7303_s1 + $0x8] sm:$0xff]  ;;  %v37_v2 = vld [vmem:[%s7303_s1] sm:$0xff]  ;;  %197 = vmatprep.mubr.f32.mxu0 %v5559_v3  ;;  %358 = vmatprep.mubr.f32.mxu1 %v5559_v3  ;;  %v40_v10 = vld [vmem:[%s7303_s1 + $0x18] sm:$0xff] }
   0x2   :  { %v42_v1 = vld [vmem:[%s7303_s1 + $0x28] sm:$0xff]  ;;  %v41_v5 = vld [vmem:[%s7303_s1 + $0x20] sm:$0xff]  ;;  %v44_v11 = vld [vmem:[%s7303_s1 + $0x38] sm:$0xff] }
   0x3   :  { %v4589_v4 = vpack.c.bf16 %v42_v1, %v38_v0  ;;  %v4591_v6 = vpack.c.bf16 %v41_v5, %v37_v2  ;;  %v46_v7 = vld [vmem:[%s7303_s1 + $0x48] sm:$0xf]  ;;  %v45_v8 = vld [vmem:[%s7303_s1 + $0x40] sm:$0xf]  ;;  %v39_v12 = vld [vmem:[%s7303_s1 + $0x10] sm:$0xff]  ;;  %v4593_v14 = vpack.c.bf16 %v44_v11, %v40_v10 }
   0x4   :  { %v21_v9 = vld [vmem:[%s7304_s0] sm:$0xff]  ;;  %v43_v13 = vld [vmem:[%s7303_s1 + $0x30] sm:$0xff]  ;;  %v48_v16 = vld [vmem:[%s7303_s1 + $0x58] sm:$0xf] }
   0x5   :  { %4590 = vmatprep.subr.bf16.mxu0 %v4589_v4  ;;  %v4595_v15 = vpack.c.bf16 %v43_v13, %v39_v12  ;;  %v22_v17 = vld [vmem:[%s7304_s0 + $0x8] sm:$0xff]  ;;  %4594 = vmatprep.subr.bf16.mxu1 %v4593_v14  ;;  %v47_v18 = vld [vmem:[%s7303_s1 + $0x50] sm:$0xf]  ;;  %v4793_v19 = vld [vmem:[%s7305_s3] ss:$28 sps:$4 sm:$0xff]  }
   0x6   :  { %4592 = vmatpush1.bf16.msra.mxu0 %v4591_v6  ;;  %v4795_v20 = vld [vmem:[%s7305_s3 + $0x4] ss:$28 sps:$4 sm:$0xff]   ;;  %v4792_v21 = vld [vmem:[%s7305_s3 + $0xc] ss:$28 sps:$4 sm:$0xff]   ;;  %v23_v22 = vld [vmem:[%s7304_s0 + $0x10] sm:$0xff] }
   0x7   :  { %3961 = vmatprep.subr.msk.mxu0 %vm120_vm0, %v46_v7  ;;  %4596 = vmatpush1.bf16.msra.mxu1 %v4595_v15  ;;  %v4790_v23 = vld [vmem:[%s7305_s3 + $0x8] ss:$28 sps:$4 sm:$0xff]   ;;  %v4801_v25 = vld [vmem:[%s7305_s3 + $0x3c] ss:$28 sps:$4 sm:$0xff]   ;;  %v4807_v30 = vld [vmem:[%s7305_s3 + $0x74] ss:$28 sps:$4 sm:$0xff]  }
   0x8   :  { %3979 = vmatprep.subr.msk.mxu1 %vm120_vm0, %v48_v16  ;;  %v4798_v24 = vld [vmem:[%s7305_s3 + $0x44] ss:$28 sps:$4 sm:$0xff]   ;;  %v4799_v26 = vld [vmem:[%s7305_s3 + $0x38] ss:$28 sps:$4 sm:$0xff]   ;;  %v4805_v31 = vld [vmem:[%s7305_s3 + $0x70] ss:$28 sps:$4 sm:$0xff]  }
   0x9   :  { %v24_v27 = vld [vmem:[%s7304_s0 + $0x18] sm:$0xff]  ;;  %v25_v32 = vld [vmem:[%s7304_s0 + $0x20] sm:$0xff]  ;;  %v4810_v34 = vld [vmem:[%s7305_s3 + $0xb4] ss:$28 sps:$4 sm:$0xff]  }
   0xa   :  { %3962 = vmatpush1.msk.msra.mxu0 %vm120_vm0, %v45_v8  ;;  %v4796_v28 = vld [vmem:[%s7305_s3 + $0x40] ss:$28 sps:$4 sm:$0xff]   ;;  %v4802_v33 = vld [vmem:[%s7305_s3 + $0x78] ss:$28 sps:$4 sm:$0xff]   ;;  %v4813_v35 = vld [vmem:[%s7305_s3 + $0xac] ss:$28 sps:$4 sm:$0xff]  }
   0xb   :  { %3963 = vmatmul.mubr.msk.f32.vlgmr.msra.gmra.mrb[0].mxu0 %vm71_vm1, %v21_v9  ;;  %1996 = vmatprep.subr.bf16.mxu0 %v4795_v20  ;;  %v4804_v29 = vld [vmem:[%s7305_s3 + $0x7c] ss:$28 sps:$4 sm:$0xff]   ;;  %v4811_v36 = vld [vmem:[%s7305_s3 + $0xa8] ss:$28 sps:$4 sm:$0xff]   ;;  %v4808_v38 = vld [vmem:[%s7305_s3 + $0xb0] ss:$28 sps:$4 sm:$0xff]  }
   0xc   :  { %203 = vmatprep.mubr.f32.mxu0 %v5559_v3  ;;  %1997 = vmatpush1.bf16.msra.mxu0 %v4793_v19  ;;  %v26_v37 = vld [vmem:[%s7304_s0 + $0x28] sm:$0xff]  ;;  %v4819_v40 = vld [vmem:[%s7305_s3 + $0xe4] ss:$28 sps:$4 sm:$0xff]   ;;  %v27_v42 = vld [vmem:[%s7304_s0 + $0x30] sm:$0xff] }
   0xd   :  { %3980 = vmatpush1.msk.msra.mxu1 %vm120_vm0, %v47_v18  ;;  %1998 = vmatprep.subr.bf16.mxu0 %v4801_v25  ;;  %v4816_v39 = vld [vmem:[%s7305_s3 + $0xec] ss:$28 sps:$4 sm:$0xff]   ;;  %v4817_v41 = vld [vmem:[%s7305_s3 + $0xe0] ss:$28 sps:$4 sm:$0xff]   ;;  %v4823_v46 = vld [vmem:[%s7305_s3 + $0x118] ss:$28 sps:$4 sm:$0xff]  }
   0xe   :  { %3981 = vmatmul.mubr.msk.f32.vlgmr.msra.gmra.mrb[0].mxu1 %vm71_vm1, %v21_v9  ;;  %2222 = vmatprep.subr.bf16.mxu1 %v4792_v21  ;;  %v4814_v43 = vld [vmem:[%s7305_s3 + $0xe8] ss:$28 sps:$4 sm:$0xff]   ;;  %v4825_v45 = vld [vmem:[%s7305_s3 + $0x11c] ss:$28 sps:$4 sm:$0xff]   ;;  %v4831_v50 = vld [vmem:[%s7305_s3 + $0x154] ss:$28 sps:$4 sm:$0xff]  }
   0xf   :  { %3964 = vmatmul.mubr.msk.f32.gmra.mrb[2].mxu0 %vm71_vm1, %v22_v17  ;;  %364 = vmatprep.mubr.f32.mxu1 %v5559_v3  ;;  %v4822_v44 = vld [vmem:[%s7305_s3 + $0x124] ss:$28 sps:$4 sm:$0xff]   ;;  %v28_v47 = vld [vmem:[%s7304_s0 + $0x38] sm:$0xff]  ;;  %v4829_v51 = vld [vmem:[%s7305_s3 + $0x150] ss:$28 sps:$4 sm:$0xff]  }
  0x10   :  { %209 = vmatprep.mubr.f32.mxu0 %v5559_v3  ;;  %2223 = vmatpush1.bf16.msra.mxu1 %v4790_v23  ;;  %v4820_v48 = vld [vmem:[%s7305_s3 + $0x120] ss:$28 sps:$4 sm:$0xff]   ;;  %v4826_v53 = vld [vmem:[%s7305_s3 + $0x158] ss:$28 sps:$4 sm:$0xff]   ;;  %v4837_v55 = vld [vmem:[%s7305_s3 + $0x18c] ss:$28 sps:$4 sm:$0xff]  }
  0x11   :  { %2224 = vmatprep.subr.bf16.mxu1 %v4798_v24  ;;  %1999 = vmatpush1.bf16.msra.mxu0 %v4799_v26  ;;  %v4828_v49 = vld [vmem:[%s7305_s3 + $0x15c] ss:$28 sps:$4 sm:$0xff]   ;;  %v29_v52 = vld [vmem:[%s7304_s0 + $0x40] sm:$0xff]  ;;  %v4834_v54 = vld [vmem:[%s7305_s3 + $0x194] ss:$28 sps:$4 sm:$0xff]  }
  0x12   :  { %3982 = vmatmul.mubr.msk.f32.gmra.mrb[2].mxu1 %vm71_vm1, %v22_v17  ;;  %2000 = vmatprep.subr.bf16.mxu0 %v4807_v30  ;;  %v4835_v56 = vld [vmem:[%s7305_s3 + $0x188] ss:$28 sps:$4 sm:$0xff]   ;;  %v4832_v58 = vld [vmem:[%s7305_s3 + $0x190] ss:$28 sps:$4 sm:$0xff]   ;;  %v4841_v63 = vld [vmem:[%s7305_s3 + $0x1c0] ss:$28 sps:$4 sm:$0xff]  }
  0x13   :  { %3965 = vmatmul.mubr.msk.f32.gmra.mrb[4].mxu0 %vm71_vm1, %v23_v22  ;;  %370 = vmatprep.mubr.f32.mxu1 %v5559_v3  ;;  %v30_v57 = vld [vmem:[%s7304_s0 + $0x48] sm:$0xff]  ;;  %v4843_v60 = vld [vmem:[%s7305_s3 + $0x1c4] ss:$28 sps:$4 sm:$0xff]   ;;  %v31_v61 = vld [vmem:[%s7304_s0 + $0x50] sm:$0xff] }
  0x14   :  { %215 = vmatprep.mubr.f32.mxu0 %v5559_v3  ;;  %2225 = vmatpush1.bf16.msra.mxu1 %v4796_v28  ;;  %v4840_v59 = vld [vmem:[%s7305_s3 + $0x1cc] ss:$28 sps:$4 sm:$0xff]   ;;  %v4846_v0 = vld [vmem:[%s7305_s3 + $0x204] ss:$28 sps:$4 sm:$0xff]   ;;  %v4849_v1 = vld [vmem:[%s7305_s3 + $0x1fc] ss:$28 sps:$4 sm:$0xff]  }
  0x15   :  { %2226 = vmatprep.subr.bf16.mxu1 %v4804_v29  ;;  %2001 = vmatpush1.bf16.msra.mxu0 %v4805_v31  ;;  %v4838_v62 = vld [vmem:[%s7305_s3 + $0x1c8] ss:$28 sps:$4 sm:$0xff]   ;;  %v4847_v2 = vld [vmem:[%s7305_s3 + $0x1f8] ss:$28 sps:$4 sm:$0xff]   ;;  %v4844_v5 = vld [vmem:[%s7305_s3 + $0x200] ss:$28 sps:$4 sm:$0xff]  }
  0x16   :  { %3983 = vmatmul.mubr.msk.f32.gmra.mrb[4].mxu1 %vm71_vm1, %v23_v22  ;;  %2002 = vmatprep.subr.bf16.mxu0 %v4813_v35  ;;  %v32_v4 = vld [vmem:[%s7304_s0 + $0x58] sm:$0xff]  ;;  %v4855_v7 = vld [vmem:[%s7305_s3 + $0x234] ss:$28 sps:$4 sm:$0xff]   ;;  %v33_v9 = vld [vmem:[%s7304_s0 + $0x60] sm:$0xff]  ;;  %v51_v35 = vlaneseq }
  0x17   :  { %3966 = vmatmul.mubr.msk.f32.gmra.mrb[6].mxu0 %vm71_vm1, %v24_v27  ;;  %376 = vmatprep.mubr.f32.mxu1 %v5559_v3  ;;  %v4852_v6 = vld [vmem:[%s7305_s3 + $0x23c] ss:$28 sps:$4 sm:$0xff]   ;;  %v4853_v8 = vld [vmem:[%s7305_s3 + $0x230] ss:$28 sps:$4 sm:$0xff]   ;;  %v4859_v13 = vld [vmem:[%s7305_s3 + $0x268] ss:$28 sps:$4 sm:$0xff]  }
  0x18   :  { %221 = vmatprep.mubr.f32.mxu0 %v5559_v3  ;;  %2227 = vmatpush1.bf16.msra.mxu1 %v4802_v33  ;;  %v4850_v10 = vld [vmem:[%s7305_s3 + $0x238] ss:$28 sps:$4 sm:$0xff]   ;;  %v4861_v12 = vld [vmem:[%s7305_s3 + $0x26c] ss:$28 sps:$4 sm:$0xff]   ;;  %v4867_v17 = vld [vmem:[%s7305_s3 + $0x2a4] ss:$28 sps:$4 sm:$0xff]  }
  0x19   :  { %2228 = vmatprep.subr.bf16.mxu1 %v4810_v34  ;;  %2003 = vmatpush1.bf16.msra.mxu0 %v4811_v36  ;;  %v4858_v11 = vld [vmem:[%s7305_s3 + $0x274] ss:$28 sps:$4 sm:$0xff]   ;;  %v34_v14 = vld [vmem:[%s7304_s0 + $0x68] sm:$0xff]  ;;  %v4865_v18 = vld [vmem:[%s7305_s3 + $0x2a0] ss:$28 sps:$4 sm:$0xff]   ;;  %v5940_v36 = vshrl.u32 %v51_v35, 7 }
  0x1a   :  { %3984 = vmatmul.mubr.msk.f32.gmra.mrb[6].mxu1 %vm71_vm1, %v24_v27  ;;  %2004 = vmatprep.subr.bf16.mxu0 %v4819_v40  ;;  %v4856_v15 = vld [vmem:[%s7305_s3 + $0x270] ss:$28 sps:$4 sm:$0xff]   ;;  %v4862_v20 = vld [vmem:[%s7305_s3 + $0x2a8] ss:$28 sps:$4 sm:$0xff]   ;;  %v36_v21 = vld [vmem:[%s7304_s0 + $0x78] sm:$0xff] }
  0x1b   :  { %3967 = vmatmul.mubr.msk.f32.gmra.mrb[8].mxu0 %vm71_vm1, %v25_v32  ;;  %382 = vmatprep.mubr.f32.mxu1 %v5559_v3  ;;  %v4864_v16 = vld [vmem:[%s7305_s3 + $0x2ac] ss:$28 sps:$4 sm:$0xff]   ;;  %v35_v19 = vld [vmem:[%s7304_s0 + $0x70] sm:$0xff]  ;;  %v4870_v22 = vld [vmem:[%s7305_s3 + $0x2e4] ss:$28 sps:$4 sm:$0xff]  }
  0x1c   :  { %227 = vmatprep.mubr.f32.mxu0 %v5559_v3  ;;  %2229 = vmatpush1.bf16.msra.mxu1 %v4808_v38  ;;  %v4873_v23 = vld [vmem:[%s7305_s3 + $0x2dc] ss:$28 sps:$4 sm:$0xff]   ;;  %v4879_v26 = vld [vmem:[%s7305_s3 + $0x314] ss:$28 sps:$4 sm:$0xff]   ;;  %v4885_v30 = vld [vmem:[%s7305_s3 + $0x34c] ss:$28 sps:$4 sm:$0xff]  }
  0x1d   :  { %2230 = vmatprep.subr.bf16.mxu1 %v4816_v39  ;;  %2005 = vmatpush1.bf16.msra.mxu0 %v4817_v41  ;;  %v4868_v24 = vld [vmem:[%s7305_s3 + $0x2e0] ss:$28 sps:$4 sm:$0xff]   ;;  %v4871_v25 = vld [vmem:[%s7305_s3 + $0x2d8] ss:$28 sps:$4 sm:$0xff]   ;;  %v4877_v28 = vld [vmem:[%s7305_s3 + $0x310] ss:$28 sps:$4 sm:$0xff]  }
  0x1e   :  { %3985 = vmatmul.mubr.msk.f32.gmra.mrb[8].mxu1 %vm71_vm1, %v25_v32  ;;  %2006 = vmatprep.subr.bf16.mxu0 %v4825_v45  ;;  %v4874_v27 = vld [vmem:[%s7305_s3 + $0x318] ss:$28 sps:$4 sm:$0xff]   ;;  %v4880_v31 = vld [vmem:[%s7305_s3 + $0x350] ss:$28 sps:$4 sm:$0xff]   ;;  %v4883_v32 = vld [vmem:[%s7305_s3 + $0x348] ss:$28 sps:$4 sm:$0xff]  }
  0x1f   :  { %3968 = vmatmul.mubr.msk.f32.gmra.mrb[10].mxu0 %vm71_vm1, %v26_v37  ;;  %388 = vmatprep.mubr.f32.mxu1 %v5559_v3  ;;  %v4882_v29 = vld [vmem:[%s7305_s3 + $0x354] ss:$28 sps:$4 sm:$0xff]   ;;  %v4888_v33 = vld [vmem:[%s7305_s3 + $0x38c] ss:$28 sps:$4 sm:$0xff]   ;;  %v4891_v34 = vld [vmem:[%s7305_s3 + $0x384] ss:$28 sps:$4 sm:$0xff]  }
  0x20   :  { %233 = vmatprep.mubr.f32.mxu0 %v5559_v3  ;;  %2231 = vmatpush1.bf16.msra.mxu1 %v4814_v43  ;;  %v49_v38 = vld [vmem:[%s7306_s2] sm:$0xf]  ;;  %v57_v39 = vsub.s32 1, %v5940_v36  ;;  %v61_v43 = vsub.s32 2, %v5940_v36  ;;  %v65_v45 = vsub.s32 3, %v5940_v36 }
  0x21   :  { %2232 = vmatprep.subr.bf16.mxu1 %v4822_v44  ;;  %2007 = vmatpush1.bf16.msra.mxu0 %v4823_v46 }
  0x22   :  { %3986 = vmatmul.mubr.msk.f32.gmra.mrb[10].mxu1 %vm71_vm1, %v26_v37  ;;  %2008 = vmatprep.subr.bf16.mxu0 %v4831_v50  ;;  %v53_v37 = vsub.s32 0, %v5940_v36 }
  0x23   :  { %3969 = vmatmul.mubr.msk.f32.gmra.mrb[12].mxu0 %vm71_vm1, %v27_v42  ;;  %394 = vmatprep.mubr.f32.mxu1 %v5559_v3 }
  0x24   :  { %239 = vmatprep.mubr.f32.mxu0 %v5559_v3  ;;  %2233 = vmatpush1.bf16.msra.mxu1 %v4820_v48  ;;  %v5949_v40 = vrot.slane %v49_v38, %v53_v37 }
  0x25   :  { %2234 = vmatprep.subr.bf16.mxu1 %v4828_v49  ;;  %2009 = vmatpush1.bf16.msra.mxu0 %v4829_v51  ;;  %v5961_v49 = vrot.slane %v49_v38, %v61_v43 }
  0x26   :  { %3987 = vmatmul.mubr.msk.f32.gmra.mrb[12].mxu1 %vm71_vm1, %v27_v42  ;;  %2010 = vmatprep.subr.bf16.mxu0 %v4837_v55  ;;  %v5953_v42 = vrot.slane %v49_v38, %v57_v39 }
  0x27   :  { %3970 = vmatmul.mubr.msk.f32.gmra.mrb[14].mxu0 %vm71_vm1, %v28_v47  ;;  %400 = vmatprep.mubr.f32.mxu1 %v5559_v3 }
  0x28   :  { %245 = vmatprep.mubr.f32.mxu0 %v5559_v3  ;;  %2235 = vmatpush1.bf16.msra.mxu1 %v4826_v53 }
  0x29   :  { %2236 = vmatprep.subr.bf16.mxu1 %v4834_v54  ;;  %2011 = vmatpush1.bf16.msra.mxu0 %v4835_v56 }
  0x2a   :  { %3988 = vmatmul.mubr.msk.f32.gmra.mrb[14].mxu1 %vm71_vm1, %v28_v47  ;;  %2012 = vmatprep.subr.bf16.mxu0 %v4843_v60 }
  0x2b   :  { %3971 = vmatmul.mubr.msk.f32.gmra.mrb[16].mxu0 %vm71_vm1, %v29_v52  ;;  %406 = vmatprep.mubr.f32.mxu1 %v5559_v3 }
  0x2c   :  { %251 = vmatprep.mubr.f32.mxu0 %v5559_v3  ;;  %2237 = vmatpush1.bf16.msra.mxu1 %v4832_v58 }
  0x2d   :  { %2238 = vmatprep.subr.bf16.mxu1 %v4840_v59  ;;  %2013 = vmatpush1.bf16.msra.mxu0 %v4841_v63 }
  0x2e   :  { %3989 = vmatmul.mubr.msk.f32.gmra.mrb[16].mxu1 %vm71_vm1, %v29_v52  ;;  %2014 = vmatprep.subr.bf16.mxu0 %v4849_v1  ;;  %v5966_v52 = vrot.slane %v49_v38, %v65_v45 }
  0x2f   :  { %3972 = vmatmul.mubr.msk.f32.gmra.mrb[18].mxu0 %vm71_vm1, %v30_v57  ;;  %412 = vmatprep.mubr.f32.mxu1 %v5559_v3 }
  0x30   :  { %257 = vmatprep.mubr.f32.mxu0 %v5559_v3  ;;  %2239 = vmatpush1.bf16.msra.mxu1 %v4838_v62 }
  0x31   :  { %2240 = vmatprep.subr.bf16.mxu1 %v4846_v0  ;;  %2015 = vmatpush1.bf16.msra.mxu0 %v4847_v2  ;;  %v4886_v2 = vld [vmem:[%s7305_s3 + $0x388] ss:$28 sps:$4 sm:$0xff]  }
  0x32   :  { %3990 = vmatmul.mubr.msk.f32.gmra.mrb[18].mxu1 %vm71_vm1, %v30_v57  ;;  %2016 = vmatprep.subr.bf16.mxu0 %v4855_v7  ;;  %v4897_v7 = vld [vmem:[%s7305_s3 + $0x3bc] ss:$28 sps:$4 sm:$0xff]  }
  0x33   :  { %3973 = vmatmul.mubr.msk.f32.gmra.mrb[20].mxu0 %vm71_vm1, %v31_v61  ;;  %418 = vmatprep.mubr.f32.mxu1 %v5559_v3 }
  0x34   :  { %263 = vmatprep.mubr.f32.mxu0 %v5559_v3  ;;  %2241 = vmatpush1.bf16.msra.mxu1 %v4844_v5 }
  0x35   :  { %2242 = vmatprep.subr.bf16.mxu1 %v4852_v6  ;;  %2017 = vmatpush1.bf16.msra.mxu0 %v4853_v8  ;;  %v4894_v6 = vld [vmem:[%s7305_s3 + $0x3c4] ss:$28 sps:$4 sm:$0xff]  }
  0x36   :  { %3991 = vmatmul.mubr.msk.f32.gmra.mrb[20].mxu1 %vm71_vm1, %v31_v61  ;;  %2018 = vmatprep.subr.bf16.mxu0 %v4861_v12 }
  0x37   :  { %3974 = vmatmul.mubr.msk.f32.gmra.mrb[22].mxu0 %vm71_vm1, %v32_v4  ;;  %424 = vmatprep.mubr.f32.mxu1 %v5559_v3 }
  0x38   :  { %269 = vmatprep.mubr.f32.mxu0 %v5559_v3  ;;  %2243 = vmatpush1.bf16.msra.mxu1 %v4850_v10 }
  0x39   :  { %2244 = vmatprep.subr.bf16.mxu1 %v4858_v11  ;;  %2019 = vmatpush1.bf16.msra.mxu0 %v4859_v13 }
  0x3a   :  { %3992 = vmatmul.mubr.msk.f32.gmra.mrb[22].mxu1 %vm71_vm1, %v32_v4  ;;  %2020 = vmatprep.subr.bf16.mxu0 %v4867_v17  ;;  %v4889_v4 = vld [vmem:[%s7305_s3 + $0x380] ss:$28 sps:$4 sm:$0xff]  }
  0x3b   :  { %3975 = vmatmul.mubr.msk.f32.gmra.mrb[24].mxu0 %vm71_vm1, %v33_v9  ;;  %430 = vmatprep.mubr.f32.mxu1 %v5559_v3 }
  0x3c   :  { %275 = vmatprep.mubr.f32.mxu0 %v5559_v3  ;;  %2245 = vmatpush1.bf16.msra.mxu1 %v4856_v15 }
  0x3d   :  { %2246 = vmatprep.subr.bf16.mxu1 %v4864_v16  ;;  %2021 = vmatpush1.bf16.msra.mxu0 %v4865_v18  ;;  %v4892_v16 = vld [vmem:[%s7305_s3 + $0x3c0] ss:$28 sps:$4 sm:$0xff]  }
  0x3e   :  { %3993 = vmatmul.mubr.msk.f32.gmra.mrb[24].mxu1 %vm71_vm1, %v33_v9  ;;  %2022 = vmatprep.subr.bf16.mxu0 %v4873_v23 }
  0x3f   :  { %3976 = vmatmul.mubr.msk.f32.gmra.mrb[26].mxu0 %vm71_vm1, %v34_v14  ;;  %436 = vmatprep.mubr.f32.mxu1 %v5559_v3 }
  0x40   :  { %281 = vmatprep.mubr.f32.mxu0 %v5559_v3  ;;  %2247 = vmatpush1.bf16.msra.mxu1 %v4862_v20  ;;  %v4895_v20 = vld [vmem:[%s7305_s3 + $0x3b8] ss:$28 sps:$4 sm:$0xff]  }
  0x41   :  { %2248 = vmatprep.subr.bf16.mxu1 %v4870_v22  ;;  %2023 = vmatpush1.bf16.msra.mxu0 %v4871_v25  ;;  %v4903_v25 = vld [vmem:[%s7305_s3 + $0x3f4] ss:$28 sps:$4 sm:$0xff]  }
  0x42   :  { %3994 = vmatmul.mubr.msk.f32.gmra.mrb[26].mxu1 %vm71_vm1, %v34_v14  ;;  %2024 = vmatprep.subr.bf16.mxu0 %v4879_v26 }
  0x43   :  { %3977 = vmatmul.mubr.msk.f32.gmra.mrb[28].mxu0 %vm71_vm1, %v35_v19  ;;  %442 = vmatprep.mubr.f32.mxu1 %v5559_v3 }
  0x44   :  { %287 = vmatprep.mubr.f32.mxu0 %v5559_v3  ;;  %2249 = vmatpush1.bf16.msra.mxu1 %v4868_v24 }
  0x45   :  { %2025 = vmatpush1.bf16.msra.mxu0 %v4877_v28 }
  0x46   :  { %3995 = vmatmul.mubr.msk.f32.gmra.mrb[28].mxu1 %vm71_vm1, %v35_v19  ;;  %2026 = vmatprep.subr.bf16.mxu0 %v4885_v30 }
  0x47   :  { %3978 = vmatmul.mubr.msk.f32.gmra.mrb[30].mxu0 %vm71_vm1, %v36_v21  ;;  %448 = vmatprep.mubr.f32.mxu1 %v5559_v3  ;;  %v4876_v3 = vld [vmem:[%s7305_s3 + $0x31c] ss:$28 sps:$4 sm:$0xff]  }
  0x48   :  { %2250 = vmatprep.subr.bf16.mxu1 %v4876_v3 }
  0x49   :  { %2251 = vmatpush1.bf16.msra.mxu1 %v4874_v27  ;;  %2027 = vmatpush1.bf16.msra.mxu0 %v4883_v32 }
  0x4a   :  { %3996 = vmatmul.mubr.msk.f32.gmra.mrb[30].mxu1 %vm71_vm1, %v36_v21  ;;  %2252 = vmatprep.subr.bf16.mxu1 %v4882_v29  ;;  %v4900_v21 = vld [vmem:[%s7305_s3 + $0x3fc] ss:$28 sps:$4 sm:$0xff]  }
  0x4b   :  { %2109 = vmatprep.subr.bf16.mxu0 %v4891_v34 }
  0x4d   :  { %2253 = vmatpush1.bf16.msra.mxu1 %v4880_v31 }
  0x4e   :  { %2335 = vmatprep.subr.bf16.mxu1 %v4888_v33 }
  0xde   :  { %v199_v41 = vpop.f32.mrb[0].mxu0 }
  0xdf   :  { %v201_v44 = vpop.f32.mrb[1].mxu0  ;;  %v200_v46 = vadd.f32 %v199_v41, %v5949_v40 }
  0xe0   :  { %v202_v47 = vadd.f32 %v201_v44, %v5953_v42  ;;  %v4898_v44 = vld [vmem:[%s7305_s3 + $0x3f8] ss:$28 sps:$4 sm:$0xff]  }
  0xe1   :  { %v455_v54 = vmax.f32 %v200_v46, 0.0  ;;  %v360_v56 = vpop.f32.mrb[0].mxu1  ;;  %v4901_v46 = vld [vmem:[%s7305_s3 + $0x3f0] ss:$28 sps:$4 sm:$0xff]  }
  0xe2   :  { %v205_v48 = vpop.f32.mrb[2].mxu0  ;;  %v456_v57 = vmax.f32 %v202_v47, 0.0  ;;  %v361_v60 = vadd.f32 %v360_v56, %v5961_v49  ;;  %v362_v61 = vpop.f32.mrb[1].mxu1 }
  0xe3   :  { %v206_v50 = vadd.f32 %v205_v48, %v5949_v40  ;;  %v207_v51 = vpop.f32.mrb[3].mxu0  ;;  %v363_v0 = vadd.f32 %v362_v61, %v5966_v52  ;;  %v4906_v48 = vld [vmem:[%s7305_s3 + $0x434] ss:$28 sps:$4 sm:$0xff]  }
  0xe4   :  { %v208_v53 = vadd.f32 %v207_v51, %v5953_v42  ;;  %v457_v11 = vmax.f32 %v361_v60, 0.0  ;;  %v4904_v60 = vld [vmem:[%s7305_s3 + $0x430] ss:$28 sps:$4 sm:$0xff]  }
  0xe5   :  { %v459_v55 = vmax.f32 %v206_v50, 0.0  ;;  %v366_v8 = vpop.f32.mrb[2].mxu1  ;;  %v458_v17 = vmax.f32 %v363_v0, 0.0  ;;  %v4909_v50 = vld [vmem:[%s7305_s3 + $0x42c] ss:$28 sps:$4 sm:$0xff]  }
  0xe6   :  { %v460_v58 = vmax.f32 %v208_v53, 0.0  ;;  %v211_v59 = vpop.f32.mrb[4].mxu0  ;;  %v367_v12 = vadd.f32 %v366_v8, %v5961_v49  ;;  %v368_v13 = vpop.f32.mrb[3].mxu1  ;;  %v4915_v8 = vld [vmem:[%s7305_s3 + $0x464] ss:$28 sps:$4 sm:$0xff]  }
  0xe7   :  { %v5970_v62 = vpack.c.bf16 %v459_v55, %v455_v54  ;;  %v213_v63 = vpop.f32.mrb[5].mxu0  ;;  %v212_v5 = vadd.f32 %v211_v59, %v5949_v40  ;;  %v369_v18 = vadd.f32 %v368_v13, %v5966_v52 }
  0xe8   :  { %v5973_v1 = vpack.c.bf16 %v460_v58, %v456_v57  ;;  %v214_v9 = vadd.f32 %v213_v63, %v5953_v42  ;;  %v461_v22 = vmax.f32 %v367_v12, 0.0 }
  0xe9   :  { %v463_v23 = vmax.f32 %v212_v5, 0.0  ;;  %v462_v3 = vmax.f32 %v369_v18, 0.0  ;;  %v372_v26 = vpop.f32.mrb[4].mxu1 }
  0xea   :  { %v217_v10 = vpop.f32.mrb[6].mxu0  ;;  %2028 = vmatprep.mubr.bf16.mxu0 %v5973_v1  ;;  %2254 = vmatprep.mubr.bf16.mxu1 %v5973_v1  ;;  %v464_v27 = vmax.f32 %v214_v9, 0.0  ;;  %v6009_v30 = vpack.c.bf16 %v461_v22, %v457_v11  ;;  %v373_v31 = vadd.f32 %v372_v26, %v5961_v49  ;;  %v374_v32 = vpop.f32.mrb[5].mxu1  ;;  %v4910_v22 = vld [vmem:[%s7305_s3 + $0x468] ss:$28 sps:$4 sm:$0xff]  }
  0xeb   :  { %v218_v14 = vadd.f32 %v217_v10, %v5949_v40  ;;  %v219_v15 = vpop.f32.mrb[7].mxu0  ;;  %2029 = vmatmul.mubr.bf16.vlgmr.msra.gmra.mrb[32].mxu0 %v5970_v62  ;;  %2255 = vmatmul.mubr.bf16.vlgmr.msra.gmra.mrb[32].mxu1 %v5970_v62  ;;  %v6014_v35 = vpack.c.bf16 %v462_v3, %v458_v17  ;;  %v375_v38 = vadd.f32 %v374_v32, %v5966_v52  ;;  %v4921_v3 = vld [vmem:[%s7305_s3 + $0x49c] ss:$28 sps:$4 sm:$0xff]  }
  0xec   :  { %v220_v19 = vadd.f32 %v219_v15, %v5953_v42  ;;  %2336 = vmatpush1.bf16.msra.mxu1 %v4886_v2  ;;  %2110 = vmatpush1.bf16.msra.mxu0 %v4889_v4  ;;  %v465_v55 = vmax.f32 %v373_v31, 0.0  ;;  %v4907_v2 = vld [vmem:[%s7305_s3 + $0x428] ss:$28 sps:$4 sm:$0xff]  }
  0xed   :  { %v467_v24 = vmax.f32 %v218_v14, 0.0  ;;  %2337 = vmatprep.subr.bf16.mxu1 %v4894_v6  ;;  %2111 = vmatprep.subr.bf16.mxu0 %v4897_v7  ;;  %v378_v51 = vpop.f32.mrb[6].mxu1  ;;  %v466_v61 = vmax.f32 %v375_v38, 0.0  ;;  %v4912_v4 = vld [vmem:[%s7305_s3 + $0x46c] ss:$28 sps:$4 sm:$0xff]  }
  0xee   :  { %v468_v28 = vmax.f32 %v220_v19, 0.0  ;;  %v223_v29 = vpop.f32.mrb[8].mxu0  ;;  %v379_v56 = vadd.f32 %v378_v51, %v5961_v49  ;;  %v380_v57 = vpop.f32.mrb[7].mxu1  ;;  %v4924_v51 = vld [vmem:[%s7305_s3 + $0x4dc] ss:$28 sps:$4 sm:$0xff]  }
  0xef   :  { %v6012_v33 = vpack.c.bf16 %v467_v24, %v463_v23  ;;  %v225_v34 = vpop.f32.mrb[9].mxu0  ;;  %v224_v47 = vadd.f32 %v223_v29, %v5949_v40  ;;  %v381_v63 = vadd.f32 %v380_v57, %v5966_v52  ;;  %v4913_v23 = vld [vmem:[%s7305_s3 + $0x460] ss:$28 sps:$4 sm:$0xff]  }
  0xf0   :  { %v6017_v41 = vpack.c.bf16 %v468_v28, %v464_v27  ;;  %2338 = vmatpush1.bf16.msra.mxu1 %v4892_v16  ;;  %2112 = vmatpush1.bf16.msra.mxu0 %v4895_v20  ;;  %v226_v53 = vadd.f32 %v225_v34, %v5953_v42  ;;  %v469_v5 = vmax.f32 %v379_v56, 0.0  ;;  %v4927_v56 = vld [vmem:[%s7305_s3 + $0x4d4] ss:$28 sps:$4 sm:$0xff]  }
  0xf1   :  { %2339 = vmatprep.subr.bf16.mxu1 %v4900_v21  ;;  %2113 = vmatprep.subr.bf16.mxu0 %v4903_v25  ;;  %v471_v6 = vmax.f32 %v224_v47, 0.0  ;;  %v470_v9 = vmax.f32 %v381_v63, 0.0  ;;  %v384_v10 = vpop.f32.mrb[8].mxu1  ;;  %v4918_v25 = vld [vmem:[%s7305_s3 + $0x4a4] ss:$28 sps:$4 sm:$0xff]  }
  0xf2   :  { %v229_v54 = vpop.f32.mrb[10].mxu0  ;;  %2038 = vmatprep.mubr.bf16.mxu0 %v6017_v41  ;;  %2264 = vmatprep.mubr.bf16.mxu1 %v6017_v41  ;;  %v472_v11 = vmax.f32 %v226_v53, 0.0  ;;  %v6053_v14 = vpack.c.bf16 %v469_v5, %v465_v55  ;;  %v385_v15 = vadd.f32 %v384_v10, %v5961_v49  ;;  %v386_v16 = vpop.f32.mrb[9].mxu1  ;;  %v4925_v10 = vld [vmem:[%s7305_s3 + $0x4d0] ss:$28 sps:$4 sm:$0xff]  }
  0xf3   :  { %v230_v58 = vadd.f32 %v229_v54, %v5949_v40  ;;  %v231_v59 = vpop.f32.mrb[11].mxu0  ;;  %2039 = vmatmul.mubr.bf16.gmra.mrb[36].mxu0 %v6012_v33  ;;  %2265 = vmatmul.mubr.bf16.gmra.mrb[36].mxu1 %v6012_v33  ;;  %v6058_v19 = vpack.c.bf16 %v470_v9, %v466_v61  ;;  %v387_v20 = vadd.f32 %v386_v16, %v5966_v52  ;;  %v4922_v9 = vld [vmem:[%s7305_s3 + $0x4d8] ss:$28 sps:$4 sm:$0xff]  }
  0xf4   :  { %v232_v0 = vadd.f32 %v231_v59, %v5953_v42  ;;  %2340 = vmatpush1.bf16.msra.mxu1 %v4898_v44  ;;  %2114 = vmatpush1.bf16.msra.mxu0 %v4901_v46  ;;  %v473_v29 = vmax.f32 %v385_v15, 0.0  ;;  %v4916_v44 = vld [vmem:[%s7305_s3 + $0x4a0] ss:$28 sps:$4 sm:$0xff]  }
  0xf5   :  { %v475_v7 = vmax.f32 %v230_v58, 0.0  ;;  %2341 = vmatprep.subr.bf16.mxu1 %v4906_v48  ;;  %2115 = vmatprep.subr.bf16.mxu0 %v4909_v50  ;;  %v390_v26 = vpop.f32.mrb[10].mxu1  ;;  %v474_v46 = vmax.f32 %v387_v20, 0.0  ;;  %v4919_v50 = vld [vmem:[%s7305_s3 + $0x498] ss:$28 sps:$4 sm:$0xff]  }
  0xf6   :  { %v476_v12 = vmax.f32 %v232_v0, 0.0  ;;  %v235_v13 = vpop.f32.mrb[12].mxu0  ;;  %v391_v31 = vadd.f32 %v390_v26, %v5961_v49  ;;  %v392_v32 = vpop.f32.mrb[11].mxu1 }
  0xf7   :  { %v6056_v17 = vpack.c.bf16 %v475_v7, %v471_v6  ;;  %v237_v18 = vpop.f32.mrb[13].mxu0  ;;  %v236_v24 = vadd.f32 %v235_v13, %v5949_v40  ;;  %v393_v47 = vadd.f32 %v392_v32, %v5966_v52  ;;  %v4933_v13 = vld [vmem:[%s7305_s3 + $0x50c] ss:$28 sps:$4 sm:$0xff]  }
  0xf8   :  { %v6061_v21 = vpack.c.bf16 %v476_v12, %v472_v11  ;;  %2342 = vmatpush1.bf16.msra.mxu1 %v4904_v60  ;;  %2116 = vmatpush1.bf16.msra.mxu0 %v4907_v2  ;;  %v238_v27 = vadd.f32 %v237_v18, %v5953_v42  ;;  %v477_v53 = vmax.f32 %v391_v31, 0.0  ;;  %v4930_v12 = vld [vmem:[%s7305_s3 + $0x514] ss:$28 sps:$4 sm:$0xff]   ;;  %v4936_v31 = vld [vmem:[%s7305_s3 + $0x54c] ss:$28 sps:$4 sm:$0xff]  }
  0xf9   :  { %2343 = vmatprep.subr.bf16.mxu1 %v4912_v4  ;;  %2117 = vmatprep.subr.bf16.mxu0 %v4915_v8  ;;  %v479_v54 = vmax.f32 %v236_v24, 0.0  ;;  %v478_v57 = vmax.f32 %v393_v47, 0.0  ;;  %v396_v58 = vpop.f32.mrb[12].mxu1 }
  0xfa   :  { %v241_v28 = vpop.f32.mrb[14].mxu0  ;;  %2048 = vmatprep.mubr.bf16.mxu0 %v6061_v21  ;;  %2274 = vmatprep.mubr.bf16.mxu1 %v6061_v21  ;;  %v480_v59 = vmax.f32 %v238_v27, 0.0  ;;  %v6097_v63 = vpack.c.bf16 %v477_v53, %v473_v29  ;;  %v397_v0 = vadd.f32 %v396_v58, %v5961_v49  ;;  %v398_v2 = vpop.f32.mrb[13].mxu1  ;;  %v4931_v29 = vld [vmem:[%s7305_s3 + $0x508] ss:$28 sps:$4 sm:$0xff]  }
  0xfb   :  { %v242_v34 = vadd.f32 %v241_v28, %v5949_v40  ;;  %v243_v38 = vpop.f32.mrb[15].mxu0  ;;  %2049 = vmatmul.mubr.bf16.gmra.mrb[40].mxu0 %v6056_v17  ;;  %2275 = vmatmul.mubr.bf16.gmra.mrb[40].mxu1 %v6056_v17  ;;  %v6102_v6 = vpack.c.bf16 %v478_v57, %v474_v46  ;;  %v399_v7 = vadd.f32 %v398_v2, %v5966_v52 }
  0xfc   :  { %v244_v48 = vadd.f32 %v243_v38, %v5953_v42  ;;  %2344 = vmatpush1.bf16.msra.mxu1 %v4910_v22  ;;  %2118 = vmatpush1.bf16.msra.mxu0 %v4913_v23  ;;  %v481_v20 = vmax.f32 %v397_v0, 0.0  ;;  %v4937_v0 = vld [vmem:[%s7305_s3 + $0x540] ss:$28 sps:$4 sm:$0xff]  }
  0xfd   :  { %v483_v55 = vmax.f32 %v242_v34, 0.0  ;;  %2345 = vmatprep.subr.bf16.mxu1 %v4918_v25  ;;  %2119 = vmatprep.subr.bf16.mxu0 %v4921_v3  ;;  %v402_v15 = vpop.f32.mrb[14].mxu1  ;;  %v4928_v3 = vld [vmem:[%s7305_s3 + $0x510] ss:$28 sps:$4 sm:$0xff]   ;;  %v482_v26 = vmax.f32 %v399_v7, 0.0 }
  0xfe   :  { %v484_v60 = vmax.f32 %v244_v48, 0.0  ;;  %v247_v61 = vpop.f32.mrb[16].mxu0  ;;  %v403_v22 = vadd.f32 %v402_v15, %v5961_v49  ;;  %v404_v23 = vpop.f32.mrb[15].mxu1  ;;  %v4945_v7 = vld [vmem:[%s7305_s3 + $0x57c] ss:$28 sps:$4 sm:$0xff]  }
  0xff   :  { %v6100_v4 = vpack.c.bf16 %v483_v55, %v479_v54  ;;  %v249_v5 = vpop.f32.mrb[17].mxu0  ;;  %v248_v11 = vadd.f32 %v247_v61, %v5949_v40  ;;  %v405_v27 = vadd.f32 %v404_v23, %v5966_v52  ;;  %v4934_v61 = vld [vmem:[%s7305_s3 + $0x548] ss:$28 sps:$4 sm:$0xff]  }
 0x100   :  { %v6105_v8 = vpack.c.bf16 %v484_v60, %v480_v59  ;;  %2346 = vmatpush1.bf16.msra.mxu1 %v4916_v44  ;;  %2120 = vmatpush1.bf16.msra.mxu0 %v4919_v50  ;;  %v250_v16 = vadd.f32 %v249_v5, %v5953_v42  ;;  %v485_v32 = vmax.f32 %v403_v22, 0.0  ;;  %v4939_v44 = vld [vmem:[%s7305_s3 + $0x544] ss:$28 sps:$4 sm:$0xff]  }
 0x101   :  { %2347 = vmatprep.subr.bf16.mxu1 %v4924_v51  ;;  %2121 = vmatprep.subr.bf16.mxu0 %v4927_v56  ;;  %v487_v34 = vmax.f32 %v248_v11, 0.0  ;;  %v486_v46 = vmax.f32 %v405_v27, 0.0  ;;  %v408_v47 = vpop.f32.mrb[16].mxu1  ;;  %v4942_v5 = vld [vmem:[%s7305_s3 + $0x584] ss:$28 sps:$4 sm:$0xff]  }
 0x102   :  { %v253_v18 = vpop.f32.mrb[18].mxu0  ;;  %2058 = vmatprep.mubr.bf16.mxu0 %v6105_v8  ;;  %2284 = vmatprep.mubr.bf16.mxu1 %v6105_v8  ;;  %v488_v48 = vmax.f32 %v250_v16, 0.0  ;;  %v6141_v53 = vpack.c.bf16 %v485_v32, %v481_v20  ;;  %v409_v54 = vadd.f32 %v408_v47, %v5961_v49  ;;  %v410_v55 = vpop.f32.mrb[17].mxu1  ;;  %v4940_v20 = vld [vmem:[%s7305_s3 + $0x580] ss:$28 sps:$4 sm:$0xff]  }
 0x103   :  { %v254_v24 = vadd.f32 %v253_v18, %v5949_v40  ;;  %v255_v25 = vpop.f32.mrb[19].mxu0  ;;  %2059 = vmatmul.mubr.bf16.gmra.mrb[44].mxu0 %v6100_v4  ;;  %2285 = vmatmul.mubr.bf16.gmra.mrb[44].mxu1 %v6100_v4  ;;  %v6146_v58 = vpack.c.bf16 %v486_v46, %v482_v26  ;;  %v411_v59 = vadd.f32 %v410_v55, %v5966_v52 }
 0x104   :  { %v256_v28 = vadd.f32 %v255_v25, %v5953_v42  ;;  %2348 = vmatpush1.bf16.msra.mxu1 %v4922_v9  ;;  %2122 = vmatpush1.bf16.msra.mxu0 %v4925_v10  ;;  %v4943_v25 = vld [vmem:[%s7305_s3 + $0x578] ss:$28 sps:$4 sm:$0xff]  }
 0x105   :  { %v491_v38 = vmax.f32 %v254_v24, 0.0  ;;  %2349 = vmatprep.subr.bf16.mxu1 %v4930_v12  ;;  %2123 = vmatprep.subr.bf16.mxu0 %v4933_v13  ;;  %v414_v9 = vpop.f32.mrb[18].mxu1  ;;  %v489_v12 = vmax.f32 %v409_v54, 0.0  ;;  %v490_v22 = vmax.f32 %v411_v59, 0.0  ;;  %v4946_v59 = vld [vmem:[%s7305_s3 + $0x5b8] ss:$28 sps:$4 sm:$0xff]  }
 0x106   :  { %v492_v50 = vmax.f32 %v256_v28, 0.0  ;;  %v259_v51 = vpop.f32.mrb[20].mxu0  ;;  %v415_v13 = vadd.f32 %v414_v9, %v5961_v49  ;;  %v416_v15 = vpop.f32.mrb[19].mxu1 }
 0x107   :  { %v6144_v56 = vpack.c.bf16 %v491_v38, %v487_v34  ;;  %v261_v57 = vpop.f32.mrb[21].mxu0  ;;  %v260_v2 = vadd.f32 %v259_v51, %v5949_v40  ;;  %v417_v23 = vadd.f32 %v416_v15, %v5966_v52 }
 0x108   :  { %v6149_v60 = vpack.c.bf16 %v492_v50, %v488_v48  ;;  %2350 = vmatpush1.bf16.msra.mxu1 %v4928_v3  ;;  %2124 = vmatpush1.bf16.msra.mxu0 %v4931_v29  ;;  %v262_v10 = vadd.f32 %v261_v57, %v5953_v42  ;;  %v4948_v3 = vld [vmem:[%s7305_s3 + $0x5bc] ss:$28 sps:$4 sm:$0xff]   ;;  %v493_v26 = vmax.f32 %v415_v13, 0.0  ;;  %v4951_v29 = vld [vmem:[%s7305_s3 + $0x5b4] ss:$28 sps:$4 sm:$0xff]  }
 0x109   :  { %2351 = vmatprep.subr.bf16.mxu1 %v4936_v31  ;;  %2125 = vmatprep.subr.bf16.mxu0 %v4939_v44  ;;  %v495_v27 = vmax.f32 %v260_v2, 0.0  ;;  %v494_v31 = vmax.f32 %v417_v23, 0.0  ;;  %v420_v32 = vpop.f32.mrb[20].mxu1  ;;  %v4954_v2 = vld [vmem:[%s7305_s3 + $0x5f4] ss:$28 sps:$4 sm:$0xff]  }
 0x10a   :  { %v265_v11 = vpop.f32.mrb[22].mxu0  ;;  %2068 = vmatprep.mubr.bf16.mxu0 %v6149_v60  ;;  %2294 = vmatprep.mubr.bf16.mxu1 %v6149_v60  ;;  %v496_v34 = vmax.f32 %v262_v10, 0.0  ;;  %v6185_v46 = vpack.c.bf16 %v493_v26, %v489_v12  ;;  %v421_v47 = vadd.f32 %v420_v32, %v5961_v49  ;;  %v422_v48 = vpop.f32.mrb[21].mxu1 }
 0x10b   :  { %v266_v16 = vadd.f32 %v265_v11, %v5949_v40  ;;  %v267_v18 = vpop.f32.mrb[23].mxu0  ;;  %2069 = vmatmul.mubr.bf16.gmra.mrb[48].mxu0 %v6144_v56  ;;  %2295 = vmatmul.mubr.bf16.gmra.mrb[48].mxu1 %v6144_v56  ;;  %v6190_v54 = vpack.c.bf16 %v494_v31, %v490_v22  ;;  %v423_v55 = vadd.f32 %v422_v48, %v5966_v52 }
 0x10c   :  { %v268_v24 = vadd.f32 %v267_v18, %v5953_v42  ;;  %2352 = vmatpush1.bf16.msra.mxu1 %v4934_v61  ;;  %2126 = vmatpush1.bf16.msra.mxu0 %v4937_v0  ;;  %v4949_v61 = vld [vmem:[%s7305_s3 + $0x5b0] ss:$28 sps:$4 sm:$0xff]   ;;  %v497_v11 = vmax.f32 %v421_v47, 0.0 }
 0x10d   :  { %v499_v28 = vmax.f32 %v266_v16, 0.0  ;;  %2353 = vmatprep.subr.bf16.mxu1 %v4942_v5  ;;  %2127 = vmatprep.subr.bf16.mxu0 %v4945_v7  ;;  %v4957_v5 = vld [vmem:[%s7305_s3 + $0x5ec] ss:$28 sps:$4 sm:$0xff]   ;;  %v426_v7 = vpop.f32.mrb[22].mxu1 }
 0x10e   :  { %v500_v38 = vmax.f32 %v268_v24, 0.0  ;;  %v271_v44 = vpop.f32.mrb[24].mxu0  ;;  %v427_v12 = vadd.f32 %v426_v7, %v5961_v49  ;;  %v428_v13 = vpop.f32.mrb[23].mxu1  ;;  %v4952_v18 = vld [vmem:[%s7305_s3 + $0x5f0] ss:$28 sps:$4 sm:$0xff]  }
 0x10f   :  { %v6188_v50 = vpack.c.bf16 %v499_v28, %v495_v27  ;;  %v273_v51 = vpop.f32.mrb[25].mxu0  ;;  %v272_v0 = vadd.f32 %v271_v44, %v5949_v40  ;;  %v429_v22 = vadd.f32 %v428_v13, %v5966_v52  ;;  %v4955_v24 = vld [vmem:[%s7305_s3 + $0x5e8] ss:$28 sps:$4 sm:$0xff]  }
 0x110   :  { %v6193_v57 = vpack.c.bf16 %v500_v38, %v496_v34  ;;  %2354 = vmatpush1.bf16.msra.mxu1 %v4940_v20  ;;  %2128 = vmatpush1.bf16.msra.mxu0 %v4943_v25  ;;  %v274_v9 = vadd.f32 %v273_v51, %v5953_v42  ;;  %v498_v20 = vmax.f32 %v423_v55, 0.0  ;;  %v4960_v25 = vld [vmem:[%s7305_s3 + $0x62c] ss:$28 sps:$4 sm:$0xff]   ;;  %v4963_v28 = vld [vmem:[%s7305_s3 + $0x624] ss:$28 sps:$4 sm:$0xff]  }
 0x111   :  { %2355 = vmatprep.subr.bf16.mxu1 %v4948_v3  ;;  %2129 = vmatprep.subr.bf16.mxu0 %v4951_v29  ;;  %v501_v3 = vmax.f32 %v427_v12, 0.0  ;;  %v503_v26 = vmax.f32 %v272_v0, 0.0  ;;  %v502_v29 = vmax.f32 %v429_v22, 0.0  ;;  %v432_v31 = vpop.f32.mrb[24].mxu1 }
 0x112   :  { %v277_v10 = vpop.f32.mrb[26].mxu0  ;;  %2078 = vmatprep.mubr.bf16.mxu0 %v6193_v57  ;;  %2304 = vmatprep.mubr.bf16.mxu1 %v6193_v57  ;;  %v504_v32 = vmax.f32 %v274_v9, 0.0  ;;  %v433_v47 = vadd.f32 %v432_v31, %v5961_v49  ;;  %v434_v48 = vpop.f32.mrb[25].mxu1  ;;  %v4966_v9 = vld [vmem:[%s7305_s3 + $0x664] ss:$28 sps:$4 sm:$0xff]  }
 0x113   :  { %v278_v15 = vadd.f32 %v277_v10, %v5949_v40  ;;  %v279_v16 = vpop.f32.mrb[27].mxu0  ;;  %2079 = vmatmul.mubr.bf16.gmra.mrb[52].mxu0 %v6188_v50  ;;  %2305 = vmatmul.mubr.bf16.gmra.mrb[52].mxu1 %v6188_v50  ;;  %v6229_v44 = vpack.c.bf16 %v501_v3, %v497_v11  ;;  %v4969_v10 = vld [vmem:[%s7305_s3 + $0x65c] ss:$28 sps:$4 sm:$0xff]   ;;  %v4975_v31 = vld [vmem:[%s7305_s3 + $0x694] ss:$28 sps:$4 sm:$0xff]  }
 0x114   :  { %v280_v23 = vadd.f32 %v279_v16, %v5953_v42  ;;  %2356 = vmatpush1.bf16.msra.mxu1 %v4946_v59  ;;  %2130 = vmatpush1.bf16.msra.mxu0 %v4949_v61  ;;  %v6234_v59 = vpack.c.bf16 %v502_v29, %v498_v20  ;;  %v435_v61 = vadd.f32 %v434_v48, %v5966_v52 }
 0x115   :  { %v507_v27 = vmax.f32 %v278_v15, 0.0  ;;  %2357 = vmatprep.subr.bf16.mxu1 %v4954_v2  ;;  %2131 = vmatprep.subr.bf16.mxu0 %v4957_v5  ;;  %v4958_v2 = vld [vmem:[%s7305_s3 + $0x628] ss:$28 sps:$4 sm:$0xff]   ;;  %v4961_v5 = vld [vmem:[%s7305_s3 + $0x620] ss:$28 sps:$4 sm:$0xff]   ;;  %v438_v11 = vpop.f32.mrb[26].mxu1 }
 0x116   :  { %v508_v34 = vmax.f32 %v280_v23, 0.0  ;;  %v283_v38 = vpop.f32.mrb[28].mxu0  ;;  %v505_v15 = vmax.f32 %v433_v47, 0.0  ;;  %v439_v16 = vadd.f32 %v438_v11, %v5961_v49  ;;  %v4964_v23 = vld [vmem:[%s7305_s3 + $0x660] ss:$28 sps:$4 sm:$0xff]  }
 0x117   :  { %v6232_v51 = vpack.c.bf16 %v507_v27, %v503_v26  ;;  %v285_v55 = vpop.f32.mrb[29].mxu0  ;;  %v284_v7 = vadd.f32 %v283_v38, %v5949_v40  ;;  %v4972_v26 = vld [vmem:[%s7305_s3 + $0x69c] ss:$28 sps:$4 sm:$0xff]  }
 0x118   :  { %v6237_v0 = vpack.c.bf16 %v508_v34, %v504_v32  ;;  %2358 = vmatpush1.bf16.msra.mxu1 %v4952_v18  ;;  %2132 = vmatpush1.bf16.msra.mxu0 %v4955_v24  ;;  %v286_v12 = vadd.f32 %v285_v55, %v5953_v42  ;;  %v440_v18 = vpop.f32.mrb[27].mxu1  ;;  %v506_v24 = vmax.f32 %v435_v61, 0.0  ;;  %v509_v27 = vmax.f32 %v439_v16, 0.0 }
 0x119   :  { %2359 = vmatprep.subr.bf16.mxu1 %v4960_v25  ;;  %2133 = vmatprep.subr.bf16.mxu0 %v4963_v28  ;;  %v441_v25 = vadd.f32 %v440_v18, %v5966_v52  ;;  %v511_v28 = vmax.f32 %v284_v7, 0.0  ;;  %v444_v32 = vpop.f32.mrb[28].mxu1 }
 0x11a   :  { %v289_v13 = vpop.f32.mrb[30].mxu0  ;;  %2088 = vmatprep.mubr.bf16.mxu0 %v6237_v0  ;;  %2314 = vmatprep.mubr.bf16.mxu1 %v6237_v0  ;;  %v512_v34 = vmax.f32 %v286_v12, 0.0  ;;  %v6273_v47 = vpack.c.bf16 %v509_v27, %v505_v15  ;;  %v445_v48 = vadd.f32 %v444_v32, %v5961_v49  ;;  %v446_v55 = vpop.f32.mrb[29].mxu1  ;;  %v4978_v12 = vld [vmem:[%s7305_s3 + $0x6d4] ss:$28 sps:$4 sm:$0xff]  }
 0x11b   :  { %v290_v20 = vadd.f32 %v289_v13, %v5949_v40  ;;  %v291_v22 = vpop.f32.mrb[31].mxu0  ;;  %2089 = vmatmul.mubr.bf16.gmra.mrb[56].mxu0 %v6232_v51  ;;  %2315 = vmatmul.mubr.bf16.gmra.mrb[56].mxu1 %v6232_v51  ;;  %v4967_v40 = vld [vmem:[%s7305_s3 + $0x658] ss:$28 sps:$4 sm:$0xff]   ;;  %v4981_v13 = vld [vmem:[%s7305_s3 + $0x6cc] ss:$28 sps:$4 sm:$0xff]  }
 0x11c   :  { %v292_v3 = vadd.f32 %v291_v22, %v5953_v42  ;;  %2360 = vmatpush1.bf16.msra.mxu1 %v4958_v2  ;;  %2134 = vmatpush1.bf16.msra.mxu0 %v4961_v5  ;;  %v510_v42 = vmax.f32 %v441_v25, 0.0  ;;  %v447_v5 = vadd.f32 %v446_v55, %v5966_v52  ;;  %v513_v15 = vmax.f32 %v445_v48, 0.0  ;;  %v4983_v27 = vld [vmem:[%s7305_s3 + $0x10] ss:$28 sps:$4 sm:$0xff]   ;;  %v4991_v48 = vld [vmem:[%s7305_s3 + $0x80] ss:$28 sps:$4 sm:$0xff]  }
 0x11d   :  { %v515_v29 = vmax.f32 %v290_v20, 0.0  ;;  %2361 = vmatprep.subr.bf16.mxu1 %v4966_v9  ;;  %2135 = vmatprep.subr.bf16.mxu0 %v4969_v10  ;;  %v4970_v9 = vld [vmem:[%s7305_s3 + $0x698] ss:$28 sps:$4 sm:$0xff]   ;;  %v4973_v10 = vld [vmem:[%s7305_s3 + $0x690] ss:$28 sps:$4 sm:$0xff]   ;;  %v450_v11 = vpop.f32.mrb[30].mxu1 }
 0x11e   :  { %v516_v38 = vmax.f32 %v292_v3, 0.0  ;;  %v6278_v2 = vpack.c.bf16 %v510_v42, %v506_v24  ;;  %v451_v16 = vadd.f32 %v450_v11, %v5961_v49  ;;  %v452_v18 = vpop.f32.mrb[31].mxu1  ;;  %v514_v20 = vmax.f32 %v447_v5, 0.0  ;;  %v4979_v24 = vld [vmem:[%s7305_s3 + $0x6c8] ss:$28 sps:$4 sm:$0xff]  }
 0x11f   :  { %v6276_v61 = vpack.c.bf16 %v515_v29, %v511_v28  ;;  %v453_v22 = vadd.f32 %v452_v18, %v5966_v52  ;;  %v4982_v49 = vld [vmem:[%s7305_s3 + $0x1d8] ss:$28 sps:$4 sm:$0xff]   ;;  %v4989_v29 = vld [vmem:[%s7305_s3 + $0x4c] ss:$28 sps:$4 sm:$0xff]  }
 0x120   :  { %v6281_v7 = vpack.c.bf16 %v516_v38, %v512_v34  ;;  %2362 = vmatpush1.bf16.msra.mxu1 %v4964_v23  ;;  %2136 = vmatpush1.bf16.msra.mxu0 %v4967_v40  ;;  %v4976_v23 = vld [vmem:[%s7305_s3 + $0x6d0] ss:$28 sps:$4 sm:$0xff]   ;;  %v517_v25 = vmax.f32 %v451_v16, 0.0  ;;  %v4986_v28 = vld [vmem:[%s7305_s3 + $0x18] ss:$28 sps:$4 sm:$0xff]  }
 0x121   :  { %2363 = vmatprep.subr.bf16.mxu1 %v4972_v26  ;;  %2137 = vmatprep.subr.bf16.mxu0 %v4975_v31  ;;  %v4985_v52 = vld [vmem:[%s7305_s3 + $0x14] ss:$28 sps:$4 sm:$0xff]   ;;  %v518_v3 = vmax.f32 %v453_v22, 0.0  ;;  %v4987_v42 = vld [vmem:[%s7305_s3 + $0x48] ss:$28 sps:$4 sm:$0xff]  }
 0x122   :  { %2098 = vmatprep.mubr.bf16.mxu0 %v6281_v7  ;;  %2324 = vmatprep.mubr.bf16.mxu1 %v6281_v7  ;;  %v6315_v40 = vpack.c.bf16 %v517_v25, %v513_v15  ;;  %v4990_v31 = vld [vmem:[%s7305_s3 + $0x210] ss:$28 sps:$4 sm:$0xff]   ;;  %v4993_v34 = vld [vmem:[%s7305_s3 + $0x84] ss:$28 sps:$4 sm:$0xff]   ;;  %v4997_v55 = vld [vmem:[%s7305_s3 + $0xbc] ss:$28 sps:$4 sm:$0xff]  }
 0x123   :  { %2099 = vmatmul.mubr.bf16.gmra.mrb[60].mxu0 %v6276_v61  ;;  %2325 = vmatmul.mubr.bf16.gmra.mrb[60].mxu1 %v6276_v61  ;;  %v6317_v26 = vpack.c.bf16 %v518_v3, %v514_v20  ;;  %v4994_v32 = vld [vmem:[%s7305_s3 + $0x50] ss:$28 sps:$4 sm:$0xff]   ;;  %v4998_v38 = vld [vmem:[%s7305_s3 + $0x248] ss:$28 sps:$4 sm:$0xff]   ;;  %v5014_v16 = vld [vmem:[%s7305_s3 + $0x2b8] ss:$28 sps:$4 sm:$0xff]  }
 0x124   :  { %2364 = vmatpush1.bf16.msra.mxu1 %v4970_v9  ;;  %2138 = vmatpush1.bf16.msra.mxu0 %v4973_v10  ;;  %v5002_v5 = vld [vmem:[%s7305_s3 + $0x88] ss:$28 sps:$4 sm:$0xff]   ;;  %v5006_v9 = vld [vmem:[%s7305_s3 + $0x280] ss:$28 sps:$4 sm:$0xff]   ;;  %v4995_v10 = vld [vmem:[%s7305_s3 + $0xb8] ss:$28 sps:$4 sm:$0xff]  }
 0x125   :  { %2141 = vmatprep.mubr.bf16.mxu0 %v6014_v35  ;;  %2367 = vmatprep.mubr.bf16.mxu1 %v6014_v35  ;;  %v5001_v11 = vld [vmem:[%s7305_s3 + $0xf4] ss:$28 sps:$4 sm:$0xff]   ;;  %v5005_v15 = vld [vmem:[%s7305_s3 + $0x12c] ss:$28 sps:$4 sm:$0xff]   ;;  %v5013_v25 = vld [vmem:[%s7305_s3 + $0x19c] ss:$28 sps:$4 sm:$0xff]  }
 0x126   :  { %2365 = vmatprep.subr.bf16.mxu1 %v4978_v12  ;;  %2139 = vmatprep.subr.bf16.mxu0 %v4981_v13  ;;  %v5010_v12 = vld [vmem:[%s7305_s3 + $0xc0] ss:$28 sps:$4 sm:$0xff]   ;;  %v4999_v13 = vld [vmem:[%s7305_s3 + $0xf0] ss:$28 sps:$4 sm:$0xff]   ;;  %v5018_v18 = vld [vmem:[%s7305_s3 + $0xf8] ss:$28 sps:$4 sm:$0xff]  }
 0x127   :  { %v5003_v20 = vld [vmem:[%s7305_s3 + $0x128] ss:$28 sps:$4 sm:$0xff]   ;;  %v5022_v22 = vld [vmem:[%s7305_s3 + $0x2f0] ss:$28 sps:$4 sm:$0xff]   ;;  %v5011_v3 = vld [vmem:[%s7305_s3 + $0x198] ss:$28 sps:$4 sm:$0xff]  }
 0x128   :  { %2366 = vmatpush1.bf16.msra.mxu1 %v4976_v23  ;;  %2140 = vmatpush1.bf16.msra.mxu0 %v4979_v24  ;;  %v5009_v23 = vld [vmem:[%s7305_s3 + $0x164] ss:$28 sps:$4 sm:$0xff]  }
 0x129   :  { %4461 = vmatprep.subr.bf16.mxu1 %v4982_v49  ;;  %2448 = vmatprep.subr.bf16.mxu0 %v4985_v52  ;;  %v5007_v24 = vld [vmem:[%s7305_s3 + $0x160] ss:$28 sps:$4 sm:$0xff]   ;;  %v5026_v49 = vld [vmem:[%s7305_s3 + $0x130] ss:$28 sps:$4 sm:$0xff]   ;;  %v5030_v52 = vld [vmem:[%s7305_s3 + $0x328] ss:$28 sps:$4 sm:$0xff]  }
 0x12b   :  { %2142 = vmatmul.mubr.bf16.vlgmr.msra.gmra.mrb[32].mxu0 %v6009_v30  ;;  %2368 = vmatmul.mubr.bf16.vlgmr.msra.gmra.mrb[32].mxu1 %v6009_v30 }
 0x12c   :  { %4462 = vmatpush3.bf16.msra.mxu1 %v4986_v28  ;;  %2449 = vmatpush1.bf16.msra.mxu0 %v4983_v27  ;;  %v5017_v27 = vld [vmem:[%s7305_s3 + $0x1d4] ss:$28 sps:$4 sm:$0xff]   ;;  %v5034_v28 = vld [vmem:[%s7305_s3 + $0x168] ss:$28 sps:$4 sm:$0xff]  }
 0x12d   :  { %2151 = vmatprep.mubr.bf16.mxu0 %v6058_v19  ;;  %2377 = vmatprep.mubr.bf16.mxu1 %v6058_v19 }
 0x12e   :  { %2450 = vmatprep.subr.bf16.mxu0 %v4989_v29  ;;  %4463 = vmatprep.subr.bf16.mxu1 %v4990_v31  ;;  %v5015_v29 = vld [vmem:[%s7305_s3 + $0x1d0] ss:$28 sps:$4 sm:$0xff]  }
 0x12f   :  { %v5021_v31 = vld [vmem:[%s7305_s3 + $0x20c] ss:$28 sps:$4 sm:$0xff]  }
 0x130   :  { %2451 = vmatpush1.bf16.msra.mxu0 %v4987_v42  ;;  %4464 = vmatpush3.bf16.msra.mxu1 %v4994_v32  ;;  %v5038_v42 = vld [vmem:[%s7305_s3 + $0x360] ss:$28 sps:$4 sm:$0xff]  }
 0x131   :  { %2452 = vmatprep.subr.bf16.mxu0 %v4993_v34  ;;  %4465 = vmatprep.subr.bf16.mxu1 %v4998_v38  ;;  %v5042_v32 = vld [vmem:[%s7305_s3 + $0x1a0] ss:$28 sps:$4 sm:$0xff]   ;;  %v5019_v34 = vld [vmem:[%s7305_s3 + $0x208] ss:$28 sps:$4 sm:$0xff]   ;;  %v5046_v38 = vld [vmem:[%s7305_s3 + $0x558] ss:$28 sps:$4 sm:$0xff]  }
 0x133   :  { %2152 = vmatmul.mubr.bf16.gmra.mrb[36].mxu0 %v6053_v14  ;;  %2378 = vmatmul.mubr.bf16.gmra.mrb[36].mxu1 %v6053_v14 }
 0x134   :  { %2453 = vmatpush1.bf16.msra.mxu0 %v4991_v48  ;;  %2161 = vmatprep.mubr.bf16.mxu0 %v6102_v6  ;;  %v5025_v48 = vld [vmem:[%s7305_s3 + $0x244] ss:$28 sps:$4 sm:$0xff]  }
 0x135   :  { %2387 = vmatprep.mubr.bf16.mxu1 %v6102_v6  ;;  %2454 = vmatprep.subr.bf16.mxu0 %v4997_v55  ;;  %v5023_v55 = vld [vmem:[%s7305_s3 + $0x240] ss:$28 sps:$4 sm:$0xff]  }
 0x136   :  { %4466 = vmatpush3.bf16.msra.mxu1 %v5002_v5  ;;  %v5029_v5 = vld [vmem:[%s7305_s3 + $0x27c] ss:$28 sps:$4 sm:$0xff]  }
 0x137   :  { %4467 = vmatprep.subr.bf16.mxu1 %v5006_v9  ;;  %v5027_v9 = vld [vmem:[%s7305_s3 + $0x278] ss:$28 sps:$4 sm:$0xff]  }
 0x138   :  { %2455 = vmatpush1.bf16.msra.mxu0 %v4995_v10  ;;  %v5033_v10 = vld [vmem:[%s7305_s3 + $0x2b4] ss:$28 sps:$4 sm:$0xff]  }
 0x139   :  { %2456 = vmatprep.subr.bf16.mxu0 %v5001_v11  ;;  %v5031_v11 = vld [vmem:[%s7305_s3 + $0x2b0] ss:$28 sps:$4 sm:$0xff]  }
 0x13a   :  { %4468 = vmatpush3.bf16.msra.mxu1 %v5010_v12  ;;  %v5037_v12 = vld [vmem:[%s7305_s3 + $0x2ec] ss:$28 sps:$4 sm:$0xff]  }
 0x13b   :  { %2162 = vmatmul.mubr.bf16.gmra.mrb[40].mxu0 %v6097_v63  ;;  %2388 = vmatmul.mubr.bf16.gmra.mrb[40].mxu1 %v6097_v63 }
 0x13c   :  { %2457 = vmatpush1.bf16.msra.mxu0 %v4999_v13  ;;  %2171 = vmatprep.mubr.bf16.mxu0 %v6146_v58  ;;  %v5035_v13 = vld [vmem:[%s7305_s3 + $0x2e8] ss:$28 sps:$4 sm:$0xff]  }
 0x13d   :  { %2397 = vmatprep.mubr.bf16.mxu1 %v6146_v58  ;;  %2458 = vmatprep.subr.bf16.mxu0 %v5005_v15  ;;  %v5041_v15 = vld [vmem:[%s7305_s3 + $0x324] ss:$28 sps:$4 sm:$0xff]  }
 0x13e   :  { %4469 = vmatprep.subr.bf16.mxu1 %v5014_v16  ;;  %v5039_v16 = vld [vmem:[%s7305_s3 + $0x320] ss:$28 sps:$4 sm:$0xff]  }
 0x13f   :  { %4470 = vmatpush3.bf16.msra.mxu1 %v5018_v18  ;;  %v5045_v18 = vld [vmem:[%s7305_s3 + $0x35c] ss:$28 sps:$4 sm:$0xff]  }
 0x140   :  { %2459 = vmatpush1.bf16.msra.mxu0 %v5003_v20  ;;  %4471 = vmatprep.subr.bf16.mxu1 %v5022_v22  ;;  %v5043_v20 = vld [vmem:[%s7305_s3 + $0x358] ss:$28 sps:$4 sm:$0xff]  }
 0x141   :  { %2460 = vmatprep.subr.bf16.mxu0 %v5009_v23  ;;  %v5049_v22 = vld [vmem:[%s7305_s3 + $0x394] ss:$28 sps:$4 sm:$0xff]  }
 0x142   :  { %v5050_v23 = vld [vmem:[%s7305_s3 + $0x398] ss:$28 sps:$4 sm:$0xff]  }
 0x143   :  { %2172 = vmatmul.mubr.bf16.gmra.mrb[44].mxu0 %v6141_v53  ;;  %2398 = vmatmul.mubr.bf16.gmra.mrb[44].mxu1 %v6141_v53 }
 0x144   :  { %2461 = vmatpush1.bf16.msra.mxu0 %v5007_v24  ;;  %2181 = vmatprep.mubr.bf16.mxu0 %v6190_v54  ;;  %v5047_v24 = vld [vmem:[%s7305_s3 + $0x390] ss:$28 sps:$4 sm:$0xff]  }
 0x145   :  { %2407 = vmatprep.mubr.bf16.mxu1 %v6190_v54  ;;  %2462 = vmatprep.subr.bf16.mxu0 %v5013_v25  ;;  %v5053_v25 = vld [vmem:[%s7305_s3 + $0x3cc] ss:$28 sps:$4 sm:$0xff]  }
 0x146   :  { %4472 = vmatpush3.bf16.msra.mxu1 %v5026_v49  ;;  %v5058_v49 = vld [vmem:[%s7305_s3 + $0x3d0] ss:$28 sps:$4 sm:$0xff]  }
 0x147   :  { %4473 = vmatprep.subr.bf16.mxu1 %v5030_v52  ;;  %v5051_v52 = vld [vmem:[%s7305_s3 + $0x3c8] ss:$28 sps:$4 sm:$0xff]  }
 0x148   :  { %2463 = vmatpush1.bf16.msra.mxu0 %v5011_v3  ;;  %v5062_v3 = vld [vmem:[%s7305_s3 + $0x5c8] ss:$28 sps:$4 sm:$0xff]  }
 0x149   :  { %2464 = vmatprep.subr.bf16.mxu0 %v5017_v27  ;;  %v5066_v27 = vld [vmem:[%s7305_s3 + $0x408] ss:$28 sps:$4 sm:$0xff]  }
 0x14a   :  { %4474 = vmatpush3.bf16.msra.mxu1 %v5034_v28  ;;  %v5061_v28 = vld [vmem:[%s7305_s3 + $0x43c] ss:$28 sps:$4 sm:$0xff]  }
 0x14b   :  { %2182 = vmatmul.mubr.bf16.gmra.mrb[48].mxu0 %v6185_v46  ;;  %2408 = vmatmul.mubr.bf16.gmra.mrb[48].mxu1 %v6185_v46 }
 0x14c   :  { %2465 = vmatpush1.bf16.msra.mxu0 %v5015_v29  ;;  %2191 = vmatprep.mubr.bf16.mxu0 %v6234_v59  ;;  %v5070_v29 = vld [vmem:[%s7305_s3 + $0x600] ss:$28 sps:$4 sm:$0xff]  }
 0x14d   :  { %2417 = vmatprep.mubr.bf16.mxu1 %v6234_v59  ;;  %2466 = vmatprep.subr.bf16.mxu0 %v5021_v31  ;;  %v5059_v31 = vld [vmem:[%s7305_s3 + $0x438] ss:$28 sps:$4 sm:$0xff]  }
 0x14e   :  { %4475 = vmatprep.subr.bf16.mxu1 %v5038_v42  ;;  %v5074_v42 = vld [vmem:[%s7305_s3 + $0x440] ss:$28 sps:$4 sm:$0xff]  }
 0x14f   :  { %4476 = vmatpush3.bf16.msra.mxu1 %v5042_v32  ;;  %v5065_v32 = vld [vmem:[%s7305_s3 + $0x474] ss:$28 sps:$4 sm:$0xff]  }
 0x150   :  { %2467 = vmatpush1.bf16.msra.mxu0 %v5019_v34  ;;  %4525 = vmatprep.subr.bf16.mxu1 %v5046_v38  ;;  %v5082_v34 = vld [vmem:[%s7305_s3 + $0x478] ss:$28 sps:$4 sm:$0xff]   ;;  %v5069_v38 = vld [vmem:[%s7305_s3 + $0x4ac] ss:$28 sps:$4 sm:$0xff]  }
 0x151   :  { %2468 = vmatprep.subr.bf16.mxu0 %v5025_v48  ;;  %v5086_v48 = vld [vmem:[%s7305_s3 + $0x670] ss:$28 sps:$4 sm:$0xff]  }
 0x153   :  { %2192 = vmatmul.mubr.bf16.gmra.mrb[52].mxu0 %v6229_v44  ;;  %2418 = vmatmul.mubr.bf16.gmra.mrb[52].mxu1 %v6229_v44 }
 0x154   :  { %2469 = vmatpush1.bf16.msra.mxu0 %v5023_v55  ;;  %2201 = vmatprep.mubr.bf16.mxu0 %v6278_v2  ;;  %v5067_v55 = vld [vmem:[%s7305_s3 + $0x4a8] ss:$28 sps:$4 sm:$0xff]  }
 0x155   :  { %2427 = vmatprep.mubr.bf16.mxu1 %v6278_v2  ;;  %2470 = vmatprep.subr.bf16.mxu0 %v5029_v5  ;;  %v5090_v5 = vld [vmem:[%s7305_s3 + $0x4b0] ss:$28 sps:$4 sm:$0xff]  }
 0x158   :  { %2471 = vmatpush1.bf16.msra.mxu0 %v5027_v9  ;;  %v5073_v9 = vld [vmem:[%s7305_s3 + $0x4e4] ss:$28 sps:$4 sm:$0xff]  }
 0x159   :  { %2472 = vmatprep.subr.bf16.mxu0 %v5033_v10  ;;  %v5098_v10 = vld [vmem:[%s7305_s3 + $0x4e8] ss:$28 sps:$4 sm:$0xff]  }
 0x15b   :  { %2202 = vmatmul.mubr.bf16.gmra.mrb[56].mxu0 %v6273_v47  ;;  %2428 = vmatmul.mubr.bf16.gmra.mrb[56].mxu1 %v6273_v47 }
 0x15c   :  { %2473 = vmatpush1.bf16.msra.mxu0 %v5031_v11  ;;  %2211 = vmatprep.mubr.bf16.mxu0 %v6317_v26  ;;  %v5077_v11 = vld [vmem:[%s7305_s3 + $0x51c] ss:$28 sps:$4 sm:$0xff]  }
 0x15d   :  { %2437 = vmatprep.mubr.bf16.mxu1 %v6317_v26  ;;  %2474 = vmatprep.subr.bf16.mxu0 %v5037_v12  ;;  %v5102_v12 = vld [vmem:[%s7305_s3 + $0x6e0] ss:$28 sps:$4 sm:$0xff]  }
 0x160   :  { %2475 = vmatpush1.bf16.msra.mxu0 %v5035_v13  ;;  %v5075_v13 = vld [vmem:[%s7305_s3 + $0x518] ss:$28 sps:$4 sm:$0xff]  }
 0x161   :  { %2476 = vmatprep.subr.bf16.mxu0 %v5041_v15  ;;  %v5106_v15 = vld [vmem:[%s7305_s3 + $0x520] ss:$28 sps:$4 sm:$0xff]  }
 0x163   :  { %2212 = vmatmul.mubr.bf16.gmra.mrb[60].mxu0 %v6315_v40  ;;  %2438 = vmatmul.mubr.bf16.gmra.mrb[60].mxu1 %v6315_v40 }
 0x164   :  { %2477 = vmatpush1.bf16.msra.mxu0 %v5039_v16  ;;  %2480 = vmatprep.mubr.bf16.mxu0 %v5973_v1  ;;  %v5081_v16 = vld [vmem:[%s7305_s3 + $0x554] ss:$28 sps:$4 sm:$0xff]  }
 0x165   :  { %2706 = vmatprep.mubr.bf16.mxu1 %v5973_v1  ;;  %2478 = vmatprep.subr.bf16.mxu0 %v5045_v18  ;;  %v5054_v1 = vld [vmem:[%s7305_s3 + $0x590] ss:$28 sps:$4 sm:$0xff]   ;;  %v5083_v18 = vld [vmem:[%s7305_s3 + $0x588] ss:$28 sps:$4 sm:$0xff]  }
 0x168   :  { %2479 = vmatpush1.bf16.msra.mxu0 %v5043_v20  ;;  %v5089_v20 = vld [vmem:[%s7305_s3 + $0x5c4] ss:$28 sps:$4 sm:$0xff]  }
 0x169   :  { %2561 = vmatprep.subr.bf16.mxu0 %v5049_v22  ;;  %v5087_v22 = vld [vmem:[%s7305_s3 + $0x5c0] ss:$28 sps:$4 sm:$0xff]  }
 0x16b   :  { %2481 = vmatmul.mubr.bf16.vlgmr.msra.gmra.mrb[64].mxu0 %v5970_v62  ;;  %2707 = vmatmul.mubr.bf16.vlgmr.msra.gmra.mrb[64].mxu1 %v5970_v62  ;;  %v5057_v62 = vld [vmem:[%s7305_s3 + $0x404] ss:$28 sps:$4 sm:$0xff]  }
 0x16c   :  { %4526 = vmatpush3.bf16.msra.mxu1 %v5050_v23  ;;  %2490 = vmatprep.mubr.bf16.mxu0 %v6017_v41  ;;  %v5097_v23 = vld [vmem:[%s7305_s3 + $0x634] ss:$28 sps:$4 sm:$0xff]  }
 0x16d   :  { %2562 = vmatpush1.bf16.msra.mxu0 %v5047_v24  ;;  %2714 = vmatprep.mubr.bf16.mxu1 %v6017_v41  ;;  %v5055_v41 = vld [vmem:[%s7305_s3 + $0x400] ss:$28 sps:$4 sm:$0xff]   ;;  %v5095_v24 = vld [vmem:[%s7305_s3 + $0x630] ss:$28 sps:$4 sm:$0xff]  }
 0x16e   :  { %2563 = vmatprep.subr.bf16.mxu0 %v5053_v25  ;;  %4527 = vmatprep.subr.bf16.mxu1 %v5054_v1  ;;  %v5105_v25 = vld [vmem:[%s7305_s3 + $0x6a4] ss:$28 sps:$4 sm:$0xff]  }
 0x16f   :  { %v5103_v1 = vld [vmem:[%s7305_s3 + $0x6a0] ss:$28 sps:$4 sm:$0xff]  }
 0x170   :  { %4528 = vmatpush3.bf16.msra.mxu1 %v5058_v49 }
 0x171   :  { %2564 = vmatpush1.bf16.msra.mxu0 %v5051_v52  ;;  %4529 = vmatprep.subr.bf16.mxu1 %v5062_v3 }
 0x172   :  { %2565 = vmatprep.subr.bf16.mxu0 %v5057_v62 }
 0x173   :  { %2491 = vmatmul.mubr.bf16.gmra.mrb[68].mxu0 %v6012_v33  ;;  %2715 = vmatmul.mubr.bf16.gmra.mrb[68].mxu1 %v6012_v33  ;;  %v5078_v33 = vld [vmem:[%s7305_s3 + $0x638] ss:$28 sps:$4 sm:$0xff]  }
 0x174   :  { %2500 = vmatprep.mubr.bf16.mxu0 %v6061_v21  ;;  %2722 = vmatprep.mubr.bf16.mxu1 %v6061_v21  ;;  %v5063_v21 = vld [vmem:[%s7305_s3 + $0x470] ss:$28 sps:$4 sm:$0xff]  }
 0x175   :  { %2566 = vmatpush1.bf16.msra.mxu0 %v5055_v41  ;;  %4530 = vmatpush3.bf16.msra.mxu1 %v5066_v27 }
 0x176   :  { %2567 = vmatprep.subr.bf16.mxu0 %v5061_v28  ;;  %4531 = vmatprep.subr.bf16.mxu1 %v5070_v29 }
 0x179   :  { %2568 = vmatpush1.bf16.msra.mxu0 %v5059_v31  ;;  %4532 = vmatpush3.bf16.msra.mxu1 %v5074_v42 }
 0x17a   :  { %2569 = vmatprep.subr.bf16.mxu0 %v5065_v32  ;;  %4533 = vmatprep.subr.bf16.mxu1 %v5078_v33 }
 0x17b   :  { %2501 = vmatmul.mubr.bf16.gmra.mrb[72].mxu0 %v6056_v17  ;;  %2723 = vmatmul.mubr.bf16.gmra.mrb[72].mxu1 %v6056_v17  ;;  %v5094_v17 = vld [vmem:[%s7305_s3 + $0x6a8] ss:$28 sps:$4 sm:$0xff]  }
 0x17c   :  { %2510 = vmatprep.mubr.bf16.mxu0 %v6105_v8  ;;  %2730 = vmatprep.mubr.bf16.mxu1 %v6105_v8  ;;  %v5071_v8 = vld [vmem:[%s7305_s3 + $0x4e0] ss:$28 sps:$4 sm:$0xff]  }
 0x17d   :  { %2570 = vmatpush1.bf16.msra.mxu0 %v5063_v21  ;;  %4534 = vmatpush3.bf16.msra.mxu1 %v5082_v34 }
 0x17e   :  { %2571 = vmatprep.subr.bf16.mxu0 %v5069_v38  ;;  %4535 = vmatprep.subr.bf16.mxu1 %v5086_v48 }
 0x181   :  { %2572 = vmatpush1.bf16.msra.mxu0 %v5067_v55  ;;  %4536 = vmatpush3.bf16.msra.mxu1 %v5090_v5 }
 0x182   :  { %2573 = vmatprep.subr.bf16.mxu0 %v5073_v9  ;;  %4537 = vmatprep.subr.bf16.mxu1 %v5094_v17 }
 0x183   :  { %2511 = vmatmul.mubr.bf16.gmra.mrb[76].mxu0 %v6100_v4  ;;  %2731 = vmatmul.mubr.bf16.gmra.mrb[76].mxu1 %v6100_v4  ;;  %v5079_v4 = vld [vmem:[%s7305_s3 + $0x550] ss:$28 sps:$4 sm:$0xff]  }
 0x184   :  { %2520 = vmatprep.mubr.bf16.mxu0 %v6149_v60  ;;  %2738 = vmatprep.mubr.bf16.mxu1 %v6149_v60  ;;  %v5085_v60 = vld [vmem:[%s7305_s3 + $0x58c] ss:$28 sps:$4 sm:$0xff]  }
 0x185   :  { %2574 = vmatpush1.bf16.msra.mxu0 %v5071_v8  ;;  %4538 = vmatpush3.bf16.msra.mxu1 %v5098_v10 }
 0x186   :  { %2575 = vmatprep.subr.bf16.mxu0 %v5077_v11  ;;  %4539 = vmatprep.subr.bf16.mxu1 %v5102_v12 }
 0x189   :  { %2576 = vmatpush1.bf16.msra.mxu0 %v5075_v13  ;;  %4540 = vmatpush3.bf16.msra.mxu1 %v5106_v15 }
 0x18a   :  { %2577 = vmatprep.subr.bf16.mxu0 %v5081_v16 }
 0x18b   :  { %2521 = vmatmul.mubr.bf16.gmra.mrb[80].mxu0 %v6144_v56  ;;  %2739 = vmatmul.mubr.bf16.gmra.mrb[80].mxu1 %v6144_v56  ;;  %v5093_v56 = vld [vmem:[%s7305_s3 + $0x5fc] ss:$28 sps:$4 sm:$0xff]  }
 0x18c   :  { %2530 = vmatprep.mubr.bf16.mxu0 %v6193_v57  ;;  %2746 = vmatprep.mubr.bf16.mxu1 %v6193_v57  ;;  %v5091_v57 = vld [vmem:[%s7305_s3 + $0x5f8] ss:$28 sps:$4 sm:$0xff]  }
 0x18d   :  { %2578 = vmatpush1.bf16.msra.mxu0 %v5079_v4 }
 0x18e   :  { %2579 = vmatprep.subr.bf16.mxu0 %v5085_v60 }
 0x191   :  { %2580 = vmatpush1.bf16.msra.mxu0 %v5083_v18 }
 0x192   :  { %2581 = vmatprep.subr.bf16.mxu0 %v5089_v20 }
 0x193   :  { %2531 = vmatmul.mubr.bf16.gmra.mrb[84].mxu0 %v6188_v50  ;;  %2747 = vmatmul.mubr.bf16.gmra.mrb[84].mxu1 %v6188_v50  ;;  %v5101_v50 = vld [vmem:[%s7305_s3 + $0x66c] ss:$28 sps:$4 sm:$0xff]  }
 0x194   :  { %2540 = vmatprep.mubr.bf16.mxu0 %v6237_v0  ;;  %2754 = vmatprep.mubr.bf16.mxu1 %v6237_v0  ;;  %v5099_v0 = vld [vmem:[%s7305_s3 + $0x668] ss:$28 sps:$4 sm:$0xff]  }
 0x195   :  { %2582 = vmatpush1.bf16.msra.mxu0 %v5087_v22 }
 0x196   :  { %2583 = vmatprep.subr.bf16.mxu0 %v5093_v56 }
 0x199   :  { %2584 = vmatpush1.bf16.msra.mxu0 %v5091_v57 }
 0x19a   :  { %2585 = vmatprep.subr.bf16.mxu0 %v5097_v23 }
 0x19b   :  { %2541 = vmatmul.mubr.bf16.gmra.mrb[88].mxu0 %v6232_v51  ;;  %2755 = vmatmul.mubr.bf16.gmra.mrb[88].mxu1 %v6232_v51  ;;  %v5109_v51 = vld [vmem:[%s7305_s3 + $0x6dc] ss:$28 sps:$4 sm:$0xff]  }
 0x19c   :  { %2550 = vmatprep.mubr.bf16.mxu0 %v6281_v7  ;;  %2762 = vmatprep.mubr.bf16.mxu1 %v6281_v7  ;;  %v5107_v7 = vld [vmem:[%s7305_s3 + $0x6d8] ss:$28 sps:$4 sm:$0xff]  }
 0x19d   :  { %2586 = vmatpush1.bf16.msra.mxu0 %v5095_v24 }
 0x19e   :  { %2587 = vmatprep.subr.bf16.mxu0 %v5101_v50 }
 0x1a1   :  { %2588 = vmatpush1.bf16.msra.mxu0 %v5099_v0 }
 0x1a2   :  { %2589 = vmatprep.subr.bf16.mxu0 %v5105_v25 }
 0x1a3   :  { %2551 = vmatmul.mubr.bf16.gmra.mrb[92].mxu0 %v6276_v61  ;;  %2763 = vmatmul.mubr.bf16.gmra.mrb[92].mxu1 %v6276_v61 }
 0x1a4   :  { %2593 = vmatprep.mubr.bf16.mxu0 %v6014_v35  ;;  %2803 = vmatprep.mubr.bf16.mxu1 %v6014_v35 }
 0x1a5   :  { %2590 = vmatpush1.bf16.msra.mxu0 %v5103_v1 }
 0x1a6   :  { %2591 = vmatprep.subr.bf16.mxu0 %v5109_v51 }
 0x1a9   :  { %2592 = vmatpush1.bf16.msra.mxu0 %v5107_v7 }
 0x1ab   :  { %2804 = vmatmul.mubr.bf16.vlgmr.msra.gmra.mrb[96].mxu1 %v6009_v30 }
 0x1ac   :  { %2594 = vmatmul.mubr.bf16.vlgmr.msra.gmra.mrb[64].mxu0 %v6009_v30  ;;  %2811 = vmatprep.mubr.bf16.mxu1 %v6058_v19  ;;  %v807_v30 = vld [vmem:[%s7307_s4] sm:$0x7f] }
 0x1ad   :  { %2603 = vmatprep.mubr.bf16.mxu0 %v6058_v19  ;;  %v6700_v35 = vrot.slane %v807_v30, %v53_v37  ;;  %v6708_v19 = vrot.slane %v807_v30, %v57_v39 }
 0x1b3   :  { %2812 = vmatmul.mubr.bf16.gmra.mrb[100].mxu1 %v6053_v14 }
 0x1b4   :  { %2604 = vmatmul.mubr.bf16.gmra.mrb[68].mxu0 %v6053_v14  ;;  %2819 = vmatprep.mubr.bf16.mxu1 %v6102_v6  ;;  %v6704_v14 = vrot.slane %v807_v30, %v61_v43 }
 0x1b5   :  { %2613 = vmatprep.mubr.bf16.mxu0 %v6102_v6 }
 0x1bb   :  { %2820 = vmatmul.mubr.bf16.gmra.mrb[104].mxu1 %v6097_v63 }
 0x1bc   :  { %2614 = vmatmul.mubr.bf16.gmra.mrb[72].mxu0 %v6097_v63  ;;  %2827 = vmatprep.mubr.bf16.mxu1 %v6146_v58  ;;  %v6712_v63 = vrot.slane %v807_v30, %v65_v45 }
 0x1bd   :  { %2623 = vmatprep.mubr.bf16.mxu0 %v6146_v58 }
 0x1c3   :  { %2828 = vmatmul.mubr.bf16.gmra.mrb[108].mxu1 %v6141_v53 }
 0x1c4   :  { %2624 = vmatmul.mubr.bf16.gmra.mrb[76].mxu0 %v6141_v53  ;;  %2835 = vmatprep.mubr.bf16.mxu1 %v6190_v54 }
 0x1c5   :  { %2633 = vmatprep.mubr.bf16.mxu0 %v6190_v54 }
 0x1cb   :  { %2836 = vmatmul.mubr.bf16.gmra.mrb[112].mxu1 %v6185_v46 }
 0x1cc   :  { %2634 = vmatmul.mubr.bf16.gmra.mrb[80].mxu0 %v6185_v46  ;;  %2843 = vmatprep.mubr.bf16.mxu1 %v6234_v59 }
 0x1cd   :  { %2643 = vmatprep.mubr.bf16.mxu0 %v6234_v59 }
 0x1d3   :  { %2844 = vmatmul.mubr.bf16.gmra.mrb[116].mxu1 %v6229_v44 }
 0x1d4   :  { %2644 = vmatmul.mubr.bf16.gmra.mrb[84].mxu0 %v6229_v44  ;;  %2851 = vmatprep.mubr.bf16.mxu1 %v6278_v2 }
 0x1d5   :  { %2653 = vmatprep.mubr.bf16.mxu0 %v6278_v2 }
 0x1db   :  { %2852 = vmatmul.mubr.bf16.gmra.mrb[120].mxu1 %v6273_v47 }
 0x1dc   :  { %2654 = vmatmul.mubr.bf16.gmra.mrb[88].mxu0 %v6273_v47  ;;  %2859 = vmatprep.mubr.bf16.mxu1 %v6317_v26 }
 0x1dd   :  { %2663 = vmatprep.mubr.bf16.mxu0 %v6317_v26 }
 0x1e3   :  { %2860 = vmatmul.mubr.bf16.gmra.mrb[124].mxu1 %v6315_v40 }
 0x1e4   :  { %2664 = vmatmul.mubr.bf16.gmra.mrb[92].mxu0 %v6315_v40 }
 0x1fe   :  { %v2143_v6 = vpop.f32.mrb[32].mxu0  ;;  %v2369_v53 = vpop.f32.mrb[32].mxu1 }
 0x1ff   :  { %v4597_v58 = vadd.f32 %v2143_v6, %v6700_v35  ;;  %v4629_v46 = vadd.f32 %v2369_v53, %v6704_v14  ;;  %v2145_v37 = vpop.f32.mrb[33].mxu0  ;;  %v2371_v54 = vpop.f32.mrb[33].mxu1 }
 0x200   :  { %v4598_v44 = vadd.f32 %v2145_v37, %v6708_v19  ;;  %v4630_v43 = vadd.f32 %v2371_v54, %v6712_v63  ;;  %v2147_v59 = vpop.f32.mrb[34].mxu0  ;;  %v2373_v47 = vpop.f32.mrb[34].mxu1 }
 0x201   :  { %v4221_v39 = vmul.f32 -1.442695, %v4597_v58  ;;  %v4223_v61 = vmul.f32 -1.442695, %v4629_v46  ;;  %v4599_v2 = vadd.f32 %v2147_v59, %v6700_v35  ;;  %v4631_v45 = vadd.f32 %v2373_v47, %v6704_v14  ;;  %v2149_v40 = vpop.f32.mrb[35].mxu0  ;;  %v2375_v26 = vpop.f32.mrb[35].mxu1 }
 0x202   :  { %v4222_v49 = vmul.f32 -1.442695, %v4598_v44  ;;  %v4224_v52 = vmul.f32 -1.442695, %v4630_v43  ;;  %v4600_v3 = vadd.f32 %v2149_v40, %v6708_v19  ;;  %v4632_v62 = vadd.f32 %v2375_v26, %v6712_v63 }
 0x203   :  { %5110 = vpow2.f32 %v4221_v39  ;;  %v4228_v41 = vmul.f32 -1.442695, %v4599_v2  ;;  %v4230_v27 = vmul.f32 -1.442695, %v4631_v45 }
 0x204   :  { %5112 = vpow2.f32 %v4223_v61  ;;  %v4229_v28 = vmul.f32 -1.442695, %v4600_v3  ;;  %v4231_v29 = vmul.f32 -1.442695, %v4632_v62 }
 0x205   :  { %5114 = vpow2.f32 %v4222_v49 }
 0x206   :  { %5116 = vpow2.f32 %v4224_v52  ;;  %v2153_v31 = vpop.f32.mrb[36].mxu0  ;;  %v2379_v42 = vpop.f32.mrb[36].mxu1 }
 0x207   :  { %5118 = vpow2.f32 %v4228_v41  ;;  %v4601_v32 = vadd.f32 %v2153_v31, %v6700_v35  ;;  %v4633_v33 = vadd.f32 %v2379_v42, %v6704_v14  ;;  %v2155_v21 = vpop.f32.mrb[37].mxu0  ;;  %v2381_v34 = vpop.f32.mrb[37].mxu1 }
 0x208   :  { %5120 = vpow2.f32 %v4230_v27  ;;  %v4602_v38 = vadd.f32 %v2155_v21, %v6708_v19  ;;  %v4634_v48 = vadd.f32 %v2381_v34, %v6712_v63  ;;  %v2157_v55 = vpop.f32.mrb[38].mxu0  ;;  %v2383_v5 = vpop.f32.mrb[38].mxu1 }
 0x209   :  { %5122 = vpow2.f32 %v4229_v28  ;;  %v4235_v9 = vmul.f32 -1.442695, %v4601_v32  ;;  %v4237_v17 = vmul.f32 -1.442695, %v4633_v33  ;;  %v4603_v8 = vadd.f32 %v2157_v55, %v6700_v35  ;;  %v2159_v10 = vpop.f32.mrb[39].mxu0  ;;  %v2385_v11 = vpop.f32.mrb[39].mxu1 }
 0x20a   :  { %5124 = vpow2.f32 %v4231_v29  ;;  %v4236_v12 = vmul.f32 -1.442695, %v4602_v38  ;;  %v4238_v13 = vmul.f32 -1.442695, %v4634_v48  ;;  %v4635_v59 = vadd.f32 %v2383_v5, %v6704_v14 }
 0x20b   :  { %5126 = vpow2.f32 %v4235_v9  ;;  %v4242_v15 = vmul.f32 -1.442695, %v4603_v8  ;;  %v4604_v61 = vadd.f32 %v2159_v10, %v6708_v19  ;;  %v4636_v26 = vadd.f32 %v2385_v11, %v6712_v63 }
 0x20c   :  { %5128 = vpow2.f32 %v4237_v17  ;;  %v4244_v42 = vmul.f32 -1.442695, %v4635_v59 }
 0x20d   :  { %v5111_v16 = vpop.eup %5110  ;;  %5130 = vpow2.f32 %v4236_v12  ;;  %v4243_v48 = vmul.f32 -1.442695, %v4604_v61  ;;  %v4245_v17 = vmul.f32 -1.442695, %v4636_v26 }
 0x20e   :  { %v5113_v4 = vpop.eup %5112  ;;  %v3204_v60 = vadd.f32 1.0, %v5111_v16  ;;  %5132 = vpow2.f32 %v4238_v13  ;;  %v2163_v18 = vpop.f32.mrb[40].mxu0 }
 0x20f   :  { %v2389_v20 = vpop.f32.mrb[40].mxu1  ;;  %v5115_v22 = vpop.eup %5114  ;;  %v3206_v56 = vadd.f32 1.0, %v5113_v4  ;;  %5134 = vpow2.f32 %v4242_v15  ;;  %v4605_v41 = vadd.f32 %v2163_v18, %v6700_v35 }
 0x210   :  { %v2165_v57 = vpop.f32.mrb[41].mxu0  ;;  %v2391_v23 = vpop.f32.mrb[41].mxu1  ;;  %5136 = vrcp.f32 %v3204_v60  ;;  %v3205_v50 = vadd.f32 1.0, %v5115_v22  ;;  %v4637_v32 = vadd.f32 %v2389_v20, %v6704_v14 }
 0x211   :  { %v5117_v24 = vpop.eup %5116  ;;  %v2167_v0 = vpop.f32.mrb[42].mxu0  ;;  %5138 = vrcp.f32 %v3206_v56  ;;  %v4606_v55 = vadd.f32 %v2165_v57, %v6708_v19  ;;  %v4638_v8 = vadd.f32 %v2391_v23, %v6712_v63  ;;  %v4249_v11 = vmul.f32 -1.442695, %v4605_v41 }
 0x212   :  { %v2393_v25 = vpop.f32.mrb[42].mxu1  ;;  %v5119_v1 = vpop.eup %5118  ;;  %v3207_v51 = vadd.f32 1.0, %v5117_v24  ;;  %5140 = vrcp.f32 %v3205_v50  ;;  %v4607_v12 = vadd.f32 %v2167_v0, %v6700_v35  ;;  %v4251_v16 = vmul.f32 -1.442695, %v4637_v32 }
 0x213   :  { %v6727_v7 = vpop.f32.mrb[43].mxu0  ;;  %v5121_v30 = vpop.eup %5120  ;;  %v3211_v6 = vadd.f32 1.0, %v5119_v1  ;;  %v4639_v4 = vadd.f32 %v2393_v25, %v6704_v14  ;;  %v4250_v20 = vmul.f32 -1.442695, %v4606_v55  ;;  %v4252_v24 = vmul.f32 -1.442695, %v4638_v8 }
 0x214   :  { %v6729_v53 = vpop.f32.mrb[43].mxu1  ;;  %v5123_v58 = vpop.eup %5122  ;;  %5142 = vrcp.f32 %v3207_v51  ;;  %v3213_v46 = vadd.f32 1.0, %v5121_v30  ;;  %v4608_v22 = vadd.f32 %v6727_v7, %v6708_v19  ;;  %v4256_v51 = vmul.f32 -1.442695, %v4607_v12 }
 0x215   :  { %v5125_v37 = vpop.eup %5124  ;;  %5144 = vrcp.f32 %v3211_v6  ;;  %v3212_v54 = vadd.f32 1.0, %v5123_v58  ;;  %v4640_v50 = vadd.f32 %v6729_v53, %v6712_v63  ;;  %v4258_v53 = vmul.f32 -1.442695, %v4639_v4 }
 0x216   :  { %v5127_v44 = vpop.eup %5126  ;;  %5146 = vrcp.f32 %v3213_v46  ;;  %v3214_v43 = vadd.f32 1.0, %v5125_v37  ;;  %v2173_v2 = vpop.f32.mrb[44].mxu0 }
 0x217   :  { %v5129_v47 = vpop.eup %5128  ;;  %5148 = vrcp.f32 %v3212_v54  ;;  %v3218_v39 = vadd.f32 1.0, %v5127_v44  ;;  %v2399_v49 = vpop.f32.mrb[44].mxu1  ;;  %v4609_v7 = vadd.f32 %v2173_v2, %v6700_v35  ;;  %v4259_v61 = vmul.f32 -1.442695, %v4640_v50 }
 0x218   :  { %v5131_v45 = vpop.eup %5130  ;;  %5150 = vrcp.f32 %v3214_v43  ;;  %v3220_v40 = vadd.f32 1.0, %v5129_v47  ;;  %v6734_v52 = vpop.f32.mrb[45].mxu0  ;;  %v4641_v37 = vadd.f32 %v2399_v49, %v6704_v14  ;;  %v4257_v47 = vmul.f32 -1.442695, %v4608_v22 }
 0x219   :  { %v5133_v3 = vpop.eup %5132  ;;  %5152 = vrcp.f32 %v3218_v39  ;;  %v3219_v62 = vadd.f32 1.0, %v5131_v45  ;;  %v6737_v27 = vpop.f32.mrb[45].mxu1 }
 0x21a   :  { %v6739_v28 = vpop.f32.mrb[46].mxu0  ;;  %v5135_v29 = vpop.eup %5134  ;;  %5154 = vrcp.f32 %v3220_v40  ;;  %v3221_v31 = vadd.f32 1.0, %v5133_v3  ;;  %v4263_v40 = vmul.f32 -1.442695, %v4609_v7 }
 0x21b   :  { %v6742_v33 = vpop.f32.mrb[46].mxu1  ;;  %v6744_v21 = vpop.f32.mrb[47].mxu0  ;;  %5156 = vrcp.f32 %v3219_v62  ;;  %v3225_v38 = vadd.f32 1.0, %v5135_v29  ;;  %v4265_v62 = vmul.f32 -1.442695, %v4641_v37  ;;  %v4611_v37 = vadd.f32 %v6739_v28, %v6700_v35 }
 0x21c   :  { %v5137_v34 = vpop.eup %5136  ;;  %v6747_v5 = vpop.f32.mrb[47].mxu1  ;;  %5158 = vrcp.f32 %v3221_v31  ;;  %v4610_v31 = vadd.f32 %v6734_v52, %v6708_v19 }
 0x21d   :  { %v5139_v9 = vpop.eup %5138  ;;  %5160 = vrcp.f32 %v3225_v38 }
 0x21e   :  { %v5141_v10 = vpop.eup %5140  ;;  %5162 = vpow2.f32 %v4244_v42  ;;  %v6754_v56 = vpop.f32.mrb[48].mxu0 }
 0x21f   :  { %v5143_v13 = vpop.eup %5142  ;;  %v4397_v15 = vpack.c.bf16 %v5141_v10, %v5137_v34  ;;  %5164 = vpow2.f32 %v4243_v48  ;;  %v6756_v57 = vpop.f32.mrb[48].mxu1 }
 0x220   :  { %v5145_v60 = vpop.eup %5144  ;;  %v4398_v18 = vpack.c.bf16 %v5143_v13, %v5139_v9  ;;  %5166 = vpow2.f32 %v4245_v17  ;;  %v6763_v0 = vpop.f32.mrb[49].mxu0 }
 0x221   :  { %v5147_v23 = vpop.eup %5146  ;;  %3892 = vst [vmem:[%s7308_s5] sm:$0xff] %v4397_v15  ;;  %v6765_v25 = vpop.f32.mrb[49].mxu1  ;;  %5168 = vpow2.f32 %v4249_v11 }
 0x222   :  { %v5149_v1 = vpop.eup %5148  ;;  %3893 = vst [vmem:[%s7308_s5 + $0x8] sm:$0xff] %v4398_v18  ;;  %v6771_v30 = vpop.f32.mrb[50].mxu0  ;;  %5170 = vpow2.f32 %v4251_v16  ;;  %v4642_v16 = vadd.f32 %v6737_v27, %v6712_v63 }
 0x223   :  { %v2413_v6 = vpop.f32.mrb[50].mxu1  ;;  %v5151_v58 = vpop.eup %5150  ;;  %v4401_v46 = vpack.c.bf16 %v5149_v1, %v5145_v60  ;;  %5172 = vpow2.f32 %v4250_v20  ;;  %v6812_v20 = vmul.f32 -1.442695, %v4610_v31 }
 0x224   :  { %v6774_v54 = vpop.f32.mrb[51].mxu0  ;;  %v2415_v44 = vpop.f32.mrb[51].mxu1  ;;  %v4402_v59 = vpack.c.bf16 %v5151_v58, %v5147_v23  ;;  %5174 = vpow2.f32 %v4252_v24  ;;  %v6780_v2 = vadd.f32 %v2413_v6, %v6704_v14 }
 0x225   :  { %v5153_v43 = vpop.eup %5152  ;;  %3897 = vst [vmem:[%s7308_s5 + $0x1c] sm:$0xff] %v4401_v46  ;;  %5176 = vpow2.f32 %v4256_v51  ;;  %v6786_v26 = vadd.f32 %v2415_v44, %v6712_v63 }
 0x226   :  { %v5155_v39 = vpop.eup %5154  ;;  %3898 = vst [vmem:[%s7308_s5 + $0x24] sm:$0xff] %v4402_v59  ;;  %5178 = vpow2.f32 %v4258_v53  ;;  %v2193_v42 = vpop.f32.mrb[52].mxu0  ;;  %v6826_v53 = vmul.f32 -1.442695, %v4642_v16  ;;  %v4643_v59 = vadd.f32 %v6742_v33, %v6704_v14 }
 0x227   :  { %v5157_v45 = vpop.eup %5156  ;;  %5180 = vpow2.f32 %v4257_v47  ;;  %v2419_v32 = vpop.f32.mrb[52].mxu1  ;;  %v6796_v38 = vadd.f32 %v2193_v42, %v6700_v35  ;;  %v4612_v47 = vadd.f32 %v6744_v21, %v6708_v19 }
 0x228   :  { %v5159_v49 = vpop.eup %5158  ;;  %v4405_v3 = vpack.c.bf16 %v5157_v45, %v5153_v43  ;;  %5182 = vpow2.f32 %v4259_v61  ;;  %v6799_v48 = vadd.f32 %v2419_v32, %v6704_v14  ;;  %v2195_v55 = vpop.f32.mrb[53].mxu0 }
 0x229   :  { %v6788_v41 = vpop.eup %5160  ;;  %v4406_v29 = vpack.c.bf16 %v5159_v49, %v5155_v39  ;;  %v2421_v9 = vpop.f32.mrb[53].mxu1  ;;  %5184 = vpow2.f32 %v4263_v40  ;;  %v6805_v8 = vadd.f32 %v2195_v55, %v6708_v19  ;;  %v4644_v40 = vadd.f32 %v6747_v5, %v6712_v63 }
 0x22a   :  { %v5163_v34 = vpop.eup %5162  ;;  %3901 = vst [vmem:[%s7308_s5 + $0x38] sm:$0xff] %v4405_v3  ;;  %v6808_v10 = vadd.f32 %v2421_v9, %v6712_v63  ;;  %v2197_v11 = vpop.f32.mrb[54].mxu0  ;;  %5186 = vpow2.f32 %v4265_v62  ;;  %v4270_v5 = vmul.f32 -1.442695, %v4611_v37 }
 0x22b   :  { %v5165_v17 = vpop.eup %5164  ;;  %3902 = vst [vmem:[%s7308_s5 + $0x40] sm:$0xff] %v4406_v29  ;;  %v3227_v52 = vadd.f32 1.0, %v5163_v34  ;;  %v2423_v12 = vpop.f32.mrb[54].mxu1  ;;  %v6815_v50 = vadd.f32 %v2197_v11, %v6700_v35 }
 0x22c   :  { %v5167_v13 = vpop.eup %5166  ;;  %v3226_v15 = vadd.f32 1.0, %v5165_v17  ;;  %v2199_v4 = vpop.f32.mrb[55].mxu0  ;;  %v6818_v1 = vadd.f32 %v2423_v12, %v6704_v14  ;;  %v4272_v12 = vmul.f32 -1.442695, %v4643_v59  ;;  %v4646_v59 = vadd.f32 %v6765_v25, %v6712_v63 }
 0x22d   :  { %v5169_v60 = vpop.eup %5168  ;;  %5188 = vrcp.f32 %v3227_v52  ;;  %v3228_v18 = vadd.f32 1.0, %v5167_v13  ;;  %v2425_v22 = vpop.f32.mrb[55].mxu1  ;;  %v6821_v27 = vadd.f32 %v2199_v4, %v6708_v19  ;;  %v4271_v13 = vmul.f32 -1.442695, %v4612_v47 }
 0x22e   :  { %v5171_v23 = vpop.eup %5170  ;;  %5190 = vrcp.f32 %v3226_v15  ;;  %v3232_v24 = vadd.f32 1.0, %v5169_v60  ;;  %v6824_v6 = vadd.f32 %v2425_v22, %v6712_v63  ;;  %v2203_v39 = vpop.f32.mrb[56].mxu0  ;;  %v4613_v60 = vadd.f32 %v6754_v56, %v6700_v35 }
 0x22f   :  { %v5173_v51 = vpop.eup %5172  ;;  %5192 = vrcp.f32 %v3228_v18  ;;  %v3234_v7 = vadd.f32 1.0, %v5171_v23  ;;  %v6837_v49 = vadd.f32 %v2203_v39, %v6700_v35  ;;  %v2429_v28 = vpop.f32.mrb[56].mxu1 }
 0x230   :  { %v5175_v58 = vpop.eup %5174  ;;  %5194 = vrcp.f32 %v3232_v24  ;;  %v3233_v46 = vadd.f32 1.0, %v5173_v51  ;;  %v2205_v3 = vpop.f32.mrb[57].mxu0  ;;  %v6840_v33 = vadd.f32 %v2429_v28, %v6704_v14 }
 0x231   :  { %v5177_v44 = vpop.eup %5176  ;;  %5196 = vrcp.f32 %v3234_v7  ;;  %v3235_v43 = vadd.f32 1.0, %v5175_v58  ;;  %v6843_v21 = vadd.f32 %v2205_v3, %v6708_v19  ;;  %v2431_v31 = vpop.f32.mrb[57].mxu1  ;;  %v4273_v58 = vmul.f32 -1.442695, %v4644_v40 }
 0x232   :  { %v5179_v61 = vpop.eup %5178  ;;  %5198 = vrcp.f32 %v3233_v46  ;;  %v3239_v45 = vadd.f32 1.0, %v5177_v44  ;;  %v2207_v42 = vpop.f32.mrb[58].mxu0  ;;  %v6846_v55 = vadd.f32 %v2431_v31, %v6712_v63  ;;  %v4645_v46 = vadd.f32 %v6756_v57, %v6704_v14 }
 0x233   :  { %v5181_v62 = vpop.eup %5180  ;;  %5200 = vrcp.f32 %v3235_v43  ;;  %v3241_v29 = vadd.f32 1.0, %v5179_v61  ;;  %v2433_v9 = vpop.f32.mrb[58].mxu1  ;;  %v6851_v18 = vadd.f32 %v2207_v42, %v6700_v35  ;;  %v4614_v43 = vadd.f32 %v6763_v0, %v6708_v19 }
 0x234   :  { %v5183_v32 = vpop.eup %5182  ;;  %5202 = vrcp.f32 %v3239_v45  ;;  %v3240_v34 = vadd.f32 1.0, %v5181_v62  ;;  %v2209_v17 = vpop.f32.mrb[59].mxu0  ;;  %v6854_v24 = vadd.f32 %v2433_v9, %v6704_v14  ;;  %v4277_v57 = vmul.f32 -1.442695, %v4613_v60 }
 0x235   :  { %v5185_v52 = vpop.eup %5184  ;;  %5204 = vrcp.f32 %v3241_v29  ;;  %v3242_v11 = vadd.f32 1.0, %v5183_v32  ;;  %v2435_v15 = vpop.f32.mrb[59].mxu1  ;;  %v6857_v51 = vadd.f32 %v2209_v17, %v6708_v19 }
 0x236   :  { %v5187_v16 = vpop.eup %5186  ;;  %5206 = vrcp.f32 %v3240_v34  ;;  %v3246_v4 = vadd.f32 1.0, %v5185_v52  ;;  %v6862_v56 = vadd.f32 %v2435_v15, %v6712_v63  ;;  %v2213_v47 = vpop.f32.mrb[60].mxu0 }
 0x237   :  { %v5189_v22 = vpop.eup %5188  ;;  %5208 = vrcp.f32 %v3242_v11  ;;  %v3248_v23 = vadd.f32 1.0, %v5187_v16  ;;  %v2439_v39 = vpop.f32.mrb[60].mxu1  ;;  %v6871_v40 = vadd.f32 %v2213_v47, %v6700_v35  ;;  %v4279_v11 = vmul.f32 -1.442695, %v4645_v46 }
 0x238   :  { %v5191_v7 = vpop.eup %5190  ;;  %5210 = vrcp.f32 %v3246_v4  ;;  %v2215_v28 = vpop.f32.mrb[61].mxu0  ;;  %v6878_v0 = vadd.f32 %v2439_v39, %v6704_v14  ;;  %v4278_v4 = vmul.f32 -1.442695, %v4614_v43 }
 0x239   :  { %v5193_v37 = vpop.eup %5192  ;;  %v4409_v44 = vpack.c.bf16 %v5191_v7, %v6788_v41  ;;  %5212 = vrcp.f32 %v3248_v23  ;;  %v2441_v3 = vpop.f32.mrb[61].mxu1  ;;  %v6881_v25 = vadd.f32 %v2215_v28, %v6708_v19  ;;  %v4286_v23 = vmul.f32 -1.442695, %v6780_v2 }
 0x23a   :  { %v5195_v61 = vpop.eup %5194  ;;  %v4410_v45 = vpack.c.bf16 %v5193_v37, %v5189_v22  ;;  %5214 = vpow2.f32 %v6812_v20  ;;  %v6884_v20 = vadd.f32 %v2441_v3, %v6712_v63  ;;  %v2217_v62 = vpop.f32.mrb[62].mxu0 }
 0x23b   :  { %v5197_v41 = vpop.eup %5196  ;;  %3905 = vst [vmem:[%s7308_s5 + $0x54] sm:$0xff] %v4409_v44  ;;  %5216 = vpow2.f32 %v6826_v53  ;;  %v2443_v29 = vpop.f32.mrb[62].mxu1  ;;  %v4615_v53 = vadd.f32 %v6771_v30, %v6700_v35  ;;  %v6892_v42 = vadd.f32 %v2217_v62, %v6700_v35  ;;  %v4280_v35 = vmul.f32 -1.442695, %v4646_v59 }
 0x23c   :  { %v5199_v31 = vpop.eup %5198  ;;  %3906 = vst [vmem:[%s7308_s5 + $0x5c] sm:$0xff] %v4410_v45  ;;  %5218 = vpow2.f32 %v4270_v5  ;;  %v6895_v32 = vadd.f32 %v2443_v29, %v6704_v14  ;;  %v2219_v34 = vpop.f32.mrb[63].mxu0  ;;  %v4616_v5 = vadd.f32 %v6774_v54, %v6708_v19 }
 0x23d   :  { %v2445_v9 = vpop.f32.mrb[63].mxu1  ;;  %v5201_v17 = vpop.eup %5200  ;;  %v4413_v52 = vpack.c.bf16 %v5199_v31, %v5195_v61  ;;  %5220 = vpow2.f32 %v4272_v12  ;;  %v6903_v14 = vadd.f32 %v2219_v34, %v6708_v19  ;;  %v4284_v54 = vmul.f32 -1.442695, %v4615_v53 }
 0x23e   :  { %v5203_v15 = vpop.eup %5202  ;;  %v4414_v16 = vpack.c.bf16 %v5201_v17, %v5197_v41  ;;  %5222 = vpow2.f32 %v4271_v13  ;;  %v6906_v12 = vadd.f32 %v2445_v9, %v6712_v63  ;;  %v4477_v7 = vpop.f32.mrb[64].mxu1  ;;  %v4285_v46 = vmul.f32 -1.442695, %v4616_v5 }
 0x23f   :  { %v5205_v30 = vpop.eup %5204  ;;  %3909 = vst [vmem:[%s7308_s5 + $0x70] sm:$0xff] %v4413_v52  ;;  %5224 = vpow2.f32 %v4273_v58  ;;  %v4478_v63 = vpop.f32.mrb[65].mxu1 }
 0x240   :  { %v5207_v60 = vpop.eup %5206  ;;  %3910 = vst [vmem:[%s7308_s5 + $0x78] sm:$0xff] %v4414_v16  ;;  %5226 = vpow2.f32 %v4277_v57  ;;  %v6919_v44 = vadd.f32 %v4478_v63, %v4477_v7  ;;  %v4480_v43 = vpop.f32.mrb[66].mxu1  ;;  %v4287_v63 = vmul.f32 -1.442695, %v6786_v26 }
 0x241   :  { %v5209_v13 = vpop.eup %5208  ;;  %v4417_v22 = vpack.c.bf16 %v5207_v60, %v5203_v15  ;;  %5228 = vpow2.f32 %v4279_v11  ;;  %v4481_v2 = vpop.f32.mrb[67].mxu1 }
 0x242   :  { %v6912_v58 = vpop.eup %5210  ;;  %v4418_v19 = vpack.c.bf16 %v5209_v13, %v5205_v30  ;;  %5230 = vpow2.f32 %v4278_v4  ;;  %v6924_v61 = vadd.f32 %v4481_v2, %v4480_v43  ;;  %v4291_v2 = vmul.f32 -1.442695, %v6796_v38 }
 0x243   :  { %v6914_v37 = vpop.eup %5212  ;;  %3913 = vst [vmem:[%s7308_s5 + $0x8c] sm:$0xff] %v4417_v22  ;;  %5232 = vpow2.f32 %v4280_v35  ;;  %v4294_v38 = vmul.f32 -1.442695, %v6808_v10  ;;  %v4299_v10 = vmul.f32 -1.442695, %v6821_v27 }
 0x244   :  { %v5215_v59 = vpop.eup %5214  ;;  %3914 = vst [vmem:[%s7308_s5 + $0x94] sm:$0xff] %v4418_v19  ;;  %5234 = vpow2.f32 %v4284_v54  ;;  %v4307_v27 = vmul.f32 -1.442695, %v6840_v33 }
 0x245   :  { %v5217_v47 = vpop.eup %5216  ;;  %v3247_v39 = vadd.f32 1.0, %v5215_v59  ;;  %5236 = vpow2.f32 %v4286_v23 }
 0x246   :  { %v5219_v45 = vpop.eup %5218  ;;  %v3249_v57 = vadd.f32 1.0, %v5217_v47  ;;  %5238 = vpow2.f32 %v4285_v46  ;;  %v4483_v53 = vpop.f32.mrb[68].mxu1 }
 0x247   :  { %v5221_v28 = vpop.eup %5220  ;;  %5240 = vrcp.f32 %v3247_v39  ;;  %v3253_v3 = vadd.f32 1.0, %v5219_v45  ;;  %v4484_v17 = vpop.f32.mrb[69].mxu1 }
 0x248   :  { %v5223_v41 = vpop.eup %5222  ;;  %5242 = vrcp.f32 %v3249_v57  ;;  %v3255_v62 = vadd.f32 1.0, %v5221_v28  ;;  %v6926_v15 = vadd.f32 %v4484_v17, %v4483_v53  ;;  %v4486_v16 = vpop.f32.mrb[70].mxu1  ;;  %v4293_v57 = vmul.f32 -1.442695, %v6799_v48 }
 0x249   :  { %v5225_v29 = vpop.eup %5224  ;;  %5244 = vrcp.f32 %v3253_v3  ;;  %v3254_v31 = vadd.f32 1.0, %v5223_v41  ;;  %v4487_v30 = vpop.f32.mrb[71].mxu1 }
 0x24a   :  { %v5227_v34 = vpop.eup %5226  ;;  %5246 = vrcp.f32 %v3255_v62  ;;  %v3256_v9 = vadd.f32 1.0, %v5225_v29  ;;  %v6928_v54 = vadd.f32 %v4487_v30, %v4486_v16  ;;  %v4292_v62 = vmul.f32 -1.442695, %v6805_v8 }
 0x24b   :  { %v5229_v52 = vpop.eup %5228  ;;  %5248 = vrcp.f32 %v3254_v31  ;;  %v3260_v11 = vadd.f32 1.0, %v5227_v34  ;;  %v4298_v8 = vmul.f32 -1.442695, %v6815_v50  ;;  %v4301_v50 = vmul.f32 -1.442695, %v6824_v6 }
 0x24c   :  { %v5231_v4 = vpop.eup %5230  ;;  %5250 = vrcp.f32 %v3256_v9  ;;  %v3262_v5 = vadd.f32 1.0, %v5229_v52  ;;  %v4300_v9 = vmul.f32 -1.442695, %v6818_v1  ;;  %v4305_v1 = vmul.f32 -1.442695, %v6837_v49 }
 0x24d   :  { %v5233_v35 = vpop.eup %5232  ;;  %5252 = vrcp.f32 %v3260_v11  ;;  %v3261_v60 = vadd.f32 1.0, %v5231_v4  ;;  %v4306_v6 = vmul.f32 -1.442695, %v6843_v21  ;;  %v4308_v49 = vmul.f32 -1.442695, %v6846_v55 }
 0x24e   :  { %v5235_v13 = vpop.eup %5234  ;;  %5254 = vrcp.f32 %v3262_v5  ;;  %v3263_v22 = vadd.f32 1.0, %v5233_v35  ;;  %v4489_v47 = vpop.f32.mrb[72].mxu1 }
 0x24f   :  { %v5237_v23 = vpop.eup %5236  ;;  %5256 = vrcp.f32 %v3261_v60  ;;  %v3267_v7 = vadd.f32 1.0, %v5235_v13  ;;  %v4490_v28 = vpop.f32.mrb[73].mxu1 }
 0x250   :  { %v5239_v19 = vpop.eup %5238  ;;  %5258 = vrcp.f32 %v3263_v22  ;;  %v3269_v46 = vadd.f32 1.0, %v5237_v23  ;;  %v6936_v26 = vadd.f32 %v4490_v28, %v4489_v47  ;;  %v4492_v29 = vpop.f32.mrb[74].mxu1 }
 0x251   :  { %v5241_v43 = vpop.eup %5240  ;;  %5260 = vrcp.f32 %v3267_v7  ;;  %v3268_v59 = vadd.f32 1.0, %v5239_v19 }
 0x252   :  { %v5243_v39 = vpop.eup %5242  ;;  %v4421_v45 = vpack.c.bf16 %v5241_v43, %v6912_v58  ;;  %5262 = vrcp.f32 %v3269_v46  ;;  %v4493_v58 = vpop.f32.mrb[75].mxu1 }
 0x253   :  { %v5245_v3 = vpop.eup %5244  ;;  %v4422_v41 = vpack.c.bf16 %v5243_v39, %v6914_v37  ;;  %5264 = vrcp.f32 %v3268_v59  ;;  %v6946_v37 = vadd.f32 %v4493_v58, %v4492_v29 }
 0x254   :  { %v5247_v31 = vpop.eup %5246  ;;  %3917 = vst [vmem:[%s7308_s5 + $0xa8] sm:$0xff] %v4421_v45  ;;  %5266 = vpow2.f32 %v4287_v63 }
 0x255   :  { %v5249_v48 = vpop.eup %5248  ;;  %3918 = vst [vmem:[%s7308_s5 + $0xb0] sm:$0xff] %v4422_v41  ;;  %5268 = vpow2.f32 %v4291_v2 }
 0x256   :  { %v5251_v53 = vpop.eup %5250  ;;  %v4425_v34 = vpack.c.bf16 %v5249_v48, %v5245_v3  ;;  %5270 = vpow2.f32 %v4293_v57  ;;  %v4495_v4 = vpop.f32.mrb[76].mxu1 }
 0x257   :  { %v5253_v17 = vpop.eup %5252  ;;  %v4426_v52 = vpack.c.bf16 %v5251_v53, %v5247_v31  ;;  %5272 = vpow2.f32 %v4292_v62  ;;  %v4496_v35 = vpop.f32.mrb[77].mxu1 }
 0x258   :  { %v5255_v11 = vpop.eup %5254  ;;  %3921 = vst [vmem:[%s7308_s5 + $0xc4] sm:$0xff] %v4425_v34  ;;  %5274 = vpow2.f32 %v4294_v38  ;;  %v6960_v22 = vadd.f32 %v4496_v35, %v4495_v4  ;;  %v4498_v23 = vpop.f32.mrb[78].mxu1 }
 0x259   :  { %v5257_v16 = vpop.eup %5256  ;;  %3922 = vst [vmem:[%s7308_s5 + $0xcc] sm:$0xff] %v4426_v52  ;;  %5276 = vpow2.f32 %v4298_v8  ;;  %v4499_v19 = vpop.f32.mrb[79].mxu1 }
 0x25a   :  { %v5259_v5 = vpop.eup %5258  ;;  %v4429_v30 = vpack.c.bf16 %v5257_v16, %v5253_v17  ;;  %5278 = vpow2.f32 %v4300_v9  ;;  %v6971_v21 = vadd.f32 %v4499_v19, %v4498_v23 }
 0x25b   :  { %v5261_v60 = vpop.eup %5260  ;;  %v4430_v13 = vpack.c.bf16 %v5259_v5, %v5255_v11  ;;  %5280 = vpow2.f32 %v4299_v10 }
 0x25c   :  { %v6962_v7 = vpop.eup %5262  ;;  %3925 = vst [vmem:[%s7308_s5 + $0xe0] sm:$0xff] %v4429_v30  ;;  %5282 = vpow2.f32 %v4301_v50 }
 0x25d   :  { %v5265_v33 = vpop.eup %5264  ;;  %3926 = vst [vmem:[%s7308_s5 + $0xe8] sm:$0xff] %v4430_v13  ;;  %5284 = vpow2.f32 %v4305_v1 }
 0x25e   :  { %v5267_v46 = vpop.eup %5266  ;;  %v4433_v63 = vpack.c.bf16 %v5265_v33, %v5261_v60  ;;  %5286 = vpow2.f32 %v4307_v27  ;;  %v4501_v45 = vpop.f32.mrb[80].mxu1  ;;  %v4312_v27 = vmul.f32 -1.442695, %v6851_v18  ;;  %v4315_v18 = vmul.f32 -1.442695, %v6862_v56 }
 0x25f   :  { %v5269_v43 = vpop.eup %5268  ;;  %v3270_v59 = vadd.f32 1.0, %v5267_v46  ;;  %5288 = vpow2.f32 %v4306_v6  ;;  %v4502_v3 = vpop.f32.mrb[81].mxu1  ;;  %v4314_v6 = vmul.f32 -1.442695, %v6854_v24  ;;  %v4313_v46 = vmul.f32 -1.442695, %v6857_v51 }
 0x260   :  { %v5271_v2 = vpop.eup %5270  ;;  %3929 = vst [vmem:[%s7308_s5 + $0xfc] sm:$0xff] %v4433_v63  ;;  %v3274_v55 = vadd.f32 1.0, %v5269_v43  ;;  %5290 = vpow2.f32 %v4308_v49  ;;  %v6976_v29 = vadd.f32 %v4502_v3, %v4501_v45  ;;  %v4504_v31 = vpop.f32.mrb[82].mxu1  ;;  %v4319_v24 = vmul.f32 -1.442695, %v6871_v40 }
 0x261   :  { %v5273_v47 = vpop.eup %5272  ;;  %5292 = vrcp.f32 %v3270_v59  ;;  %v3276_v39 = vadd.f32 1.0, %v5271_v2  ;;  %v4505_v48 = vpop.f32.mrb[83].mxu1  ;;  %v4321_v51 = vmul.f32 -1.442695, %v6878_v0  ;;  %v4320_v56 = vmul.f32 -1.442695, %v6881_v25 }
 0x262   :  { %v5275_v57 = vpop.eup %5274  ;;  %5294 = vrcp.f32 %v3274_v55  ;;  %v3275_v28 = vadd.f32 1.0, %v5273_v47  ;;  %v6978_v34 = vadd.f32 %v4505_v48, %v4504_v31  ;;  %v4322_v40 = vmul.f32 -1.442695, %v6884_v20  ;;  %v7007_v25 = vld [vmem:[%s7307_s4] sm:$0x7f] }
 0x263   :  { %v5277_v41 = vpop.eup %5276  ;;  %5296 = vrcp.f32 %v3276_v39  ;;  %v3277_v62 = vadd.f32 1.0, %v5275_v57  ;;  %v4326_v0 = vmul.f32 -1.442695, %v6892_v42  ;;  %v4327_v42 = vmul.f32 -1.442695, %v6903_v14 }
 0x264   :  { %v5279_v38 = vpop.eup %5278  ;;  %5298 = vrcp.f32 %v3275_v28  ;;  %v3281_v58 = vadd.f32 1.0, %v5277_v41 }
 0x265   :  { %v5281_v8 = vpop.eup %5280  ;;  %5300 = vrcp.f32 %v3277_v62  ;;  %v3283_v53 = vadd.f32 1.0, %v5279_v38  ;;  %v4328_v38 = vmul.f32 -1.442695, %v6895_v32 }
 0x266   :  { %v5283_v9 = vpop.eup %5282  ;;  %5302 = vrcp.f32 %v3281_v58  ;;  %v3282_v17 = vadd.f32 1.0, %v5281_v8  ;;  %v4507_v4 = vpop.f32.mrb[84].mxu1 }
 0x267   :  { %v5285_v52 = vpop.eup %5284  ;;  %5304 = vrcp.f32 %v3283_v53  ;;  %v3284_v10 = vadd.f32 1.0, %v5283_v9  ;;  %v4508_v35 = vpop.f32.mrb[85].mxu1 }
 0x268   :  { %v5287_v11 = vpop.eup %5286  ;;  %5306 = vrcp.f32 %v3282_v17  ;;  %v3288_v50 = vadd.f32 1.0, %v5285_v52  ;;  %v6982_v23 = vadd.f32 %v4508_v35, %v4507_v4  ;;  %v4510_v49 = vpop.f32.mrb[86].mxu1  ;;  %v4329_v52 = vmul.f32 -1.442695, %v6906_v12 }
 0x269   :  { %v5289_v16 = vpop.eup %5288  ;;  %5308 = vrcp.f32 %v3284_v10  ;;  %v3290_v1 = vadd.f32 1.0, %v5287_v11  ;;  %v4511_v63 = vpop.f32.mrb[87].mxu1 }
 0x26a   :  { %v5291_v5 = vpop.eup %5290  ;;  %5310 = vrcp.f32 %v3288_v50  ;;  %v3289_v30 = vadd.f32 1.0, %v5289_v16  ;;  %v6987_v59 = vadd.f32 %v4511_v63, %v4510_v49 }
 0x26b   :  { %v5293_v60 = vpop.eup %5292  ;;  %5312 = vrcp.f32 %v3290_v1  ;;  %v3291_v13 = vadd.f32 1.0, %v5291_v5 }
 0x26c   :  { %v5295_v19 = vpop.eup %5294  ;;  %v4434_v33 = vpack.c.bf16 %v5293_v60, %v6962_v7  ;;  %5314 = vrcp.f32 %v3289_v30  ;;  %v835_v7 = vsub.s32 6, %v5940_v36 }
 0x26d   :  { %v5297_v43 = vpop.eup %5296  ;;  %5316 = vrcp.f32 %v3291_v13 }
 0x26e   :  { %v5299_v2 = vpop.eup %5298  ;;  %3930 = vst [vmem:[%s7308_s5 + $0x104] sm:$0xff] %v4434_v33  ;;  %5318 = vpow2.f32 %v4312_v27  ;;  %v4513_v28 = vpop.f32.mrb[88].mxu1  ;;  %v7010_v41 = vrot.slane %v7007_v25, %v835_v7  ;;  %v827_v33 = vsub.s32 4, %v5940_v36 }
 0x26f   :  { %v5301_v55 = vpop.eup %5300  ;;  %v4437_v47 = vpack.c.bf16 %v5299_v2, %v5295_v19  ;;  %5320 = vpow2.f32 %v4314_v6  ;;  %v4514_v62 = vpop.f32.mrb[89].mxu1 }
 0x270   :  { %v5303_v39 = vpop.eup %5302  ;;  %v4438_v45 = vpack.c.bf16 %v5301_v55, %v5297_v43  ;;  %5322 = vpow2.f32 %v4313_v46  ;;  %v4515_v58 = vadd.f32 %v4514_v62, %v4513_v28  ;;  %v4516_v48 = vpop.f32.mrb[90].mxu1 }
 0x271   :  { %v5305_v57 = vpop.eup %5304  ;;  %3933 = vst [vmem:[%s7308_s5 + $0x118] sm:$0xff] %v4437_v47  ;;  %5324 = vpow2.f32 %v4315_v18  ;;  %v4517_v9 = vpop.f32.mrb[91].mxu1  ;;  %v831_v18 = vsub.s32 5, %v5940_v36 }
 0x272   :  { %v5307_v3 = vpop.eup %5306  ;;  %3934 = vst [vmem:[%s7308_s5 + $0x120] sm:$0xff] %v4438_v45  ;;  %5326 = vpow2.f32 %v4319_v24  ;;  %v7019_v10 = vadd.f32 %v4515_v58, %v7010_v41  ;;  %v4518_v32 = vadd.f32 %v4517_v9, %v4516_v48 }
 0x273   :  { %v5309_v31 = vpop.eup %5308  ;;  %v4441_v20 = vpack.c.bf16 %v5307_v3, %v5303_v39  ;;  %5328 = vpow2.f32 %v4321_v51  ;;  %v7045_v28 = vrot.slane %v7007_v25, %v831_v18 }
 0x274   :  { %v5311_v8 = vpop.eup %5310  ;;  %v4442_v53 = vpack.c.bf16 %v5309_v31, %v5305_v57  ;;  %5330 = vpow2.f32 %v4320_v56  ;;  %v7025_v16 = vadd.f32 %v4518_v32, %v7010_v41  ;;  %v7042_v57 = vrot.slane %v7007_v25, %v827_v33 }
 0x275   :  { %v5313_v17 = vpop.eup %5312  ;;  %3937 = vst [vmem:[%s7308_s5 + $0x134] sm:$0xff] %v4441_v20  ;;  %5332 = vpow2.f32 %v4322_v40  ;;  %v2712_v32 = vadd.f32 %v6924_v61, %v7010_v41 }
 0x276   :  { %v5315_v11 = vpop.eup %5314  ;;  %3938 = vst [vmem:[%s7308_s5 + $0x13c] sm:$0xff] %v4442_v53  ;;  %5334 = vpow2.f32 %v4326_v0  ;;  %v4519_v30 = vpop.f32.mrb[92].mxu1 }
 0x277   :  { %v5317_v14 = vpop.eup %5316  ;;  %v4445_v50 = vpack.c.bf16 %v5315_v11, %v5311_v8  ;;  %5336 = vpow2.f32 %v4328_v38  ;;  %v4520_v60 = vpop.f32.mrb[93].mxu1  ;;  %v2709_v38 = vadd.f32 %v6919_v44, %v7010_v41 }
 0x278   :  { %v5319_v1 = vpop.eup %5318  ;;  %v4446_v4 = vpack.c.bf16 %v5317_v14, %v5313_v17  ;;  %5338 = vpow2.f32 %v4327_v42  ;;  %v4521_v49 = vadd.f32 %v4520_v60, %v4519_v30  ;;  %v4522_v19 = vpop.f32.mrb[94].mxu1 }
 0x279   :  { %v5321_v12 = vpop.eup %5320  ;;  %3941 = vst [vmem:[%s7308_s5 + $0x150] sm:$0xff] %v4445_v50  ;;  %v3295_v5 = vadd.f32 1.0, %v5319_v1  ;;  %5340 = vpow2.f32 %v4329_v52  ;;  %v4523_v43 = vpop.f32.mrb[95].mxu1 }
 0x27a   :  { %v5323_v27 = vpop.eup %5322  ;;  %3942 = vst [vmem:[%s7308_s5 + $0x158] sm:$0xff] %v4446_v4  ;;  %v3297_v35 = vadd.f32 1.0, %v5321_v12  ;;  %v7036_v7 = vadd.f32 %v4521_v49, %v7010_v41  ;;  %v4524_v55 = vadd.f32 %v4523_v43, %v4522_v19 }
 0x27b   :  { %v5325_v13 = vpop.eup %5324  ;;  %5342 = vrcp.f32 %v3295_v5  ;;  %v3296_v6 = vadd.f32 1.0, %v5323_v27 }
 0x27c   :  { %v5327_v46 = vpop.eup %5326  ;;  %5344 = vrcp.f32 %v3297_v35  ;;  %v3298_v63 = vadd.f32 1.0, %v5325_v13  ;;  %v7039_v56 = vadd.f32 %v4524_v55, %v7010_v41 }
 0x27d   :  { %v5329_v2 = vpop.eup %5328  ;;  %5346 = vrcp.f32 %v3296_v6  ;;  %v3302_v24 = vadd.f32 1.0, %v5327_v46 }
 0x27e   :  { %v5331_v47 = vpop.eup %5330  ;;  %5348 = vrcp.f32 %v3298_v63  ;;  %v3304_v51 = vadd.f32 1.0, %v5329_v2  ;;  %v4541_v62 = vpop.f32.mrb[96].mxu1 }
 0x27f   :  { %v5333_v39 = vpop.eup %5332  ;;  %5350 = vrcp.f32 %v3302_v24  ;;  %v3303_v45 = vadd.f32 1.0, %v5331_v47  ;;  %v2595_v58 = vpop.f32.mrb[64].mxu0 }
 0x280   :  { %v5335_v36 = vpop.eup %5334  ;;  %5352 = vrcp.f32 %v3304_v51  ;;  %v3305_v40 = vadd.f32 1.0, %v5333_v39  ;;  %v4542_v48 = vpop.f32.mrb[97].mxu1  ;;  %v4661_v42 = vadd.f32 %v2595_v58, %v7042_v57  ;;  %v2717_v39 = vadd.f32 %v6926_v15, %v7010_v41 }
 0x281   :  { %v5337_v3 = vpop.eup %5336  ;;  %5354 = vrcp.f32 %v3303_v45  ;;  %v3309_v0 = vadd.f32 1.0, %v5335_v36  ;;  %v2597_v9 = vpop.f32.mrb[65].mxu0  ;;  %v4543_v25 = vadd.f32 %v4542_v48, %v4541_v62 }
 0x282   :  { %v5339_v31 = vpop.eup %5338  ;;  %5356 = vrcp.f32 %v3305_v40  ;;  %v3311_v20 = vadd.f32 1.0, %v5337_v3  ;;  %v4544_v17 = vpop.f32.mrb[98].mxu1  ;;  %v4662_v11 = vadd.f32 %v2597_v9, %v7045_v28  ;;  %v4225_v1 = vmul.f32 -1.442695, %v4661_v42 }
 0x283   :  { %v5341_v8 = vpop.eup %5340  ;;  %5358 = vrcp.f32 %v3309_v0  ;;  %v3310_v53 = vadd.f32 1.0, %v5339_v31  ;;  %v2599_v14 = vpop.f32.mrb[66].mxu0  ;;  %v2806_v4 = vadd.f32 %v4543_v25, %v2709_v38  ;;  %v2720_v25 = vadd.f32 %v6928_v54, %v7010_v41 }
 0x284   :  { %5360 = vrcp.f32 %v3311_v20  ;;  %v3312_v52 = vadd.f32 1.0, %v5341_v8  ;;  %v4545_v50 = vpop.f32.mrb[99].mxu1  ;;  %v4663_v12 = vadd.f32 %v2599_v14, %v7042_v57  ;;  %v2601_v5 = vpop.f32.mrb[67].mxu0  ;;  %v4226_v27 = vmul.f32 -1.442695, %v4662_v11 }
 0x285   :  { %v5343_v44 = vpop.eup %5342  ;;  %5362 = vrcp.f32 %v3310_v53  ;;  %v4664_v35 = vadd.f32 %v2601_v5, %v7045_v28  ;;  %v4546_v60 = vadd.f32 %v4545_v50, %v4544_v17  ;;  %v4227_v61 = vmul.f32 -1.442695, %v2806_v4 }
 0x286   :  { %v5345_v30 = vpop.eup %5344  ;;  %5364 = vrcp.f32 %v3312_v52  ;;  %v4232_v6 = vmul.f32 -1.442695, %v4663_v12  ;;  %v4547_v18 = vpop.f32.mrb[100].mxu1 }
 0x287   :  { %v5347_v13 = vpop.eup %5346  ;;  %5366 = vpow2.f32 %v4225_v1  ;;  %v4233_v33 = vmul.f32 -1.442695, %v4664_v35  ;;  %v2809_v46 = vadd.f32 %v4546_v60, %v2712_v32  ;;  %v2605_v55 = vpop.f32.mrb[68].mxu0  ;;  %v2725_v35 = vadd.f32 %v6936_v26, %v7010_v41 }
 0x288   :  { %v5349_v49 = vpop.eup %5348  ;;  %v4449_v19 = vpack.c.bf16 %v5347_v13, %v5343_v44  ;;  %5368 = vpow2.f32 %v4226_v27  ;;  %v4548_v47 = vpop.f32.mrb[101].mxu1  ;;  %v4665_v45 = vadd.f32 %v2605_v55, %v7042_v57 }
 0x289   :  { %v5351_v63 = vpop.eup %5350  ;;  %v4450_v43 = vpack.c.bf16 %v5349_v49, %v5345_v30  ;;  %5370 = vpow2.f32 %v4227_v61  ;;  %v4234_v24 = vmul.f32 -1.442695, %v2809_v46  ;;  %v2607_v36 = vpop.f32.mrb[69].mxu0  ;;  %v4549_v40 = vadd.f32 %v4548_v47, %v4547_v18 }
 0x28a   :  { %v5353_v2 = vpop.eup %5352  ;;  %3945 = vst [vmem:[%s7308_s5 + $0x16c] sm:$0xff] %v4449_v19  ;;  %5372 = vpow2.f32 %v4232_v6  ;;  %v4550_v3 = vpop.f32.mrb[102].mxu1  ;;  %v4666_v31 = vadd.f32 %v2607_v36, %v7045_v28  ;;  %v4239_v8 = vmul.f32 -1.442695, %v4665_v45 }
 0x28b   :  { %v5355_v51 = vpop.eup %5354  ;;  %3946 = vst [vmem:[%s7308_s5 + $0x174] sm:$0xff] %v4450_v43  ;;  %5374 = vpow2.f32 %v4233_v33  ;;  %v2609_v20 = vpop.f32.mrb[70].mxu0  ;;  %v2814_v53 = vadd.f32 %v4549_v40, %v2717_v39 }
 0x28c   :  { %v5357_v0 = vpop.eup %5356  ;;  %v4453_v62 = vpack.c.bf16 %v5355_v51, %v5351_v63  ;;  %5376 = vpow2.f32 %v4234_v24  ;;  %v4551_v38 = vpop.f32.mrb[103].mxu1  ;;  %v4667_v42 = vadd.f32 %v2609_v20, %v7042_v57  ;;  %v4240_v17 = vmul.f32 -1.442695, %v4666_v31 }
 0x28d   :  { %v5359_v58 = vpop.eup %5358  ;;  %v4454_v48 = vpack.c.bf16 %v5357_v0, %v5353_v2  ;;  %v2611_v15 = vpop.f32.mrb[71].mxu0  ;;  %v4552_v32 = vadd.f32 %v4551_v38, %v4550_v3  ;;  %5378 = vpow2.f32 %v4239_v8  ;;  %v4241_v14 = vmul.f32 -1.442695, %v2814_v53 }
 0x28e   :  { %v5361_v9 = vpop.eup %5360  ;;  %3949 = vst [vmem:[%s7308_s5 + $0x188] sm:$0xff] %v4453_v62  ;;  %v4668_v52 = vadd.f32 %v2611_v15, %v7045_v28  ;;  %v4246_v50 = vmul.f32 -1.442695, %v4667_v42  ;;  %5380 = vpow2.f32 %v4240_v17  ;;  %v4553_v54 = vpop.f32.mrb[104].mxu1  ;;  %v2728_v0 = vadd.f32 %v6946_v37, %v7010_v41 }
 0x28f   :  { %v5363_v11 = vpop.eup %5362  ;;  %3950 = vst [vmem:[%s7308_s5 + $0x190] sm:$0xff] %v4454_v48  ;;  %v2817_v12 = vadd.f32 %v4552_v32, %v2720_v25  ;;  %5382 = vpow2.f32 %v4241_v14  ;;  %v2615_v13 = vpop.f32.mrb[72].mxu0  ;;  %v2733_v48 = vadd.f32 %v6960_v22, %v7010_v41 }
 0x290   :  { %v5365_v44 = vpop.eup %5364  ;;  %v4457_v1 = vpack.c.bf16 %v5363_v11, %v5359_v58  ;;  %v4247_v4 = vmul.f32 -1.442695, %v4668_v52  ;;  %5384 = vpow2.f32 %v4246_v50  ;;  %v4554_v61 = vpop.f32.mrb[105].mxu1  ;;  %v4669_v19 = vadd.f32 %v2615_v13, %v7042_v57 }
 0x291   :  { %v5367_v5 = vpop.eup %5366  ;;  %v4458_v30 = vpack.c.bf16 %v5365_v44, %v5361_v9  ;;  %v2617_v33 = vpop.f32.mrb[73].mxu0  ;;  %v4555_v46 = vadd.f32 %v4554_v61, %v4553_v54  ;;  %v4248_v36 = vmul.f32 -1.442695, %v2817_v12  ;;  %v2736_v61 = vadd.f32 %v6971_v21, %v7010_v41 }
 0x292   :  { %v5369_v27 = vpop.eup %5368  ;;  %3953 = vst [vmem:[%s7308_s5 + $0x1a4] sm:$0xff] %v4457_v1  ;;  %v3208_v60 = vadd.f32 1.0, %v5367_v5  ;;  %5386 = vpow2.f32 %v4247_v4  ;;  %v4556_v63 = vpop.f32.mrb[106].mxu1  ;;  %v4253_v3 = vmul.f32 -1.442695, %v4669_v19  ;;  %v4670_v20 = vadd.f32 %v2617_v33, %v7045_v28 }
 0x293   :  { %v5371_v6 = vpop.eup %5370  ;;  %3954 = vst [vmem:[%s7308_s5 + $0x1ac] sm:$0xff] %v4458_v30  ;;  %v3209_v49 = vadd.f32 1.0, %v5369_v27  ;;  %v2619_v26 = vpop.f32.mrb[74].mxu0  ;;  %v2822_v47 = vadd.f32 %v4555_v46, %v2725_v35 }
 0x294   :  { %v5373_v43 = vpop.eup %5372  ;;  %5388 = vrcp.f32 %v3208_v60  ;;  %v3210_v18 = vadd.f32 1.0, %v5371_v6  ;;  %v4557_v2 = vpop.f32.mrb[107].mxu1  ;;  %v4671_v37 = vadd.f32 %v2619_v26, %v7042_v57  ;;  %v4254_v12 = vmul.f32 -1.442695, %v4670_v20 }
 0x295   :  { %v5375_v24 = vpop.eup %5374  ;;  %5390 = vrcp.f32 %v3209_v49  ;;  %v3215_v55 = vadd.f32 1.0, %v5373_v43  ;;  %v2621_v51 = vpop.f32.mrb[75].mxu0  ;;  %v4558_v62 = vadd.f32 %v4557_v2, %v4556_v63  ;;  %v4255_v35 = vmul.f32 -1.442695, %v2822_v47 }
 0x296   :  { %v5377_v39 = vpop.eup %5376  ;;  %5392 = vrcp.f32 %v3210_v18  ;;  %v3216_v45 = vadd.f32 1.0, %v5375_v24  ;;  %v4559_v38 = vpop.f32.mrb[108].mxu1  ;;  %v4672_v50 = vadd.f32 %v2621_v51, %v7045_v28  ;;  %v4260_v6 = vmul.f32 -1.442695, %v4671_v37 }
 0x297   :  { %5394 = vrcp.f32 %v3215_v55  ;;  %v3217_v40 = vadd.f32 1.0, %v5377_v39  ;;  %v5379_v31 = vpop.eup %5378  ;;  %v2825_v53 = vadd.f32 %v4558_v62, %v2728_v0  ;;  %v2625_v42 = vpop.f32.mrb[76].mxu0 }
 0x298   :  { %5396 = vrcp.f32 %v3216_v45  ;;  %v5381_v58 = vpop.eup %5380  ;;  %v3222_v8 = vadd.f32 1.0, %v5379_v31  ;;  %v4560_v15 = vpop.f32.mrb[109].mxu1  ;;  %v4673_v60 = vadd.f32 %v2625_v42, %v7042_v57  ;;  %v4261_v46 = vmul.f32 -1.442695, %v4672_v50 }
 0x299   :  { %5398 = vrcp.f32 %v3217_v40  ;;  %v5383_v9 = vpop.eup %5382  ;;  %v3223_v25 = vadd.f32 1.0, %v5381_v58  ;;  %v2627_v17 = vpop.f32.mrb[77].mxu0  ;;  %v4561_v52 = vadd.f32 %v4560_v15, %v4559_v38  ;;  %v4262_v63 = vmul.f32 -1.442695, %v2825_v53 }
 0x29a   :  { %5400 = vpow2.f32 %v4248_v36  ;;  %v4562_v32 = vpop.f32.mrb[110].mxu1  ;;  %v5385_v11 = vpop.eup %5384  ;;  %v3224_v14 = vadd.f32 1.0, %v5383_v9  ;;  %v4674_v26 = vadd.f32 %v2627_v17, %v7045_v28  ;;  %v4267_v21 = vmul.f32 -1.442695, %v4673_v60 }
 0x29b   :  { %5402 = vpow2.f32 %v4253_v3  ;;  %v2629_v22 = vpop.f32.mrb[78].mxu0  ;;  %v4563_v44 = vpop.f32.mrb[111].mxu1  ;;  %v3229_v4 = vadd.f32 1.0, %v5385_v11  ;;  %v2830_v5 = vadd.f32 %v4561_v52, %v2733_v48  ;;  %v2741_v45 = vadd.f32 %v6976_v29, %v7010_v41 }
 0x29c   :  { %5404 = vrcp.f32 %v3222_v8  ;;  %v5387_v1 = vpop.eup %5386  ;;  %v2631_v30 = vpop.f32.mrb[79].mxu0  ;;  %v4564_v49 = vadd.f32 %v4563_v44, %v4562_v32  ;;  %v4675_v40 = vadd.f32 %v2629_v22, %v7042_v57  ;;  %v4268_v53 = vmul.f32 -1.442695, %v4674_v26 }
 0x29d   :  { %5406 = vrcp.f32 %v3223_v25  ;;  %v3230_v27 = vadd.f32 1.0, %v5387_v1  ;;  %v4676_v20 = vadd.f32 %v2631_v30, %v7045_v28  ;;  %v4269_v25 = vmul.f32 -1.442695, %v2830_v5 }
 0x29e   :  { %v5389_v54 = vpop.eup %5388  ;;  %5408 = vrcp.f32 %v3224_v14  ;;  %v2833_v2 = vadd.f32 %v4564_v49, %v2736_v61  ;;  %v4565_v24 = vpop.f32.mrb[112].mxu1  ;;  %v2744_v52 = vadd.f32 %v6978_v34, %v7010_v41  ;;  %v4274_v32 = vmul.f32 -1.442695, %v4675_v40 }
 0x29f   :  { %v5391_v13 = vpop.eup %5390  ;;  %5410 = vrcp.f32 %v3229_v4  ;;  %v2635_v47 = vpop.f32.mrb[80].mxu0  ;;  %v4275_v22 = vmul.f32 -1.442695, %v4676_v20  ;;  %v2749_v49 = vadd.f32 %v6982_v23, %v7010_v41 }
 0x2a0   :  { %v5393_v19 = vpop.eup %5392  ;;  %v4399_v33 = vpack.c.bf16 %v5391_v13, %v5389_v54  ;;  %5412 = vrcp.f32 %v3230_v27  ;;  %v4566_v51 = vpop.f32.mrb[113].mxu1  ;;  %v4276_v4 = vmul.f32 -1.442695, %v2833_v2  ;;  %v4677_v60 = vadd.f32 %v2635_v47, %v7042_v57 }
 0x2a1   :  { %v5395_v43 = vpop.eup %5394  ;;  %v4400_v18 = vpack.c.bf16 %v5393_v19, %v5393_v19  ;;  %5414 = vpow2.f32 %v4254_v12  ;;  %v2637_v3 = vpop.f32.mrb[81].mxu0  ;;  %v4567_v38 = vadd.f32 %v4566_v51, %v4565_v24  ;;  %v2752_v47 = vadd.f32 %v6987_v59, %v7010_v41 }
 0x2a2   :  { %v5397_v55 = vpop.eup %5396  ;;  %3894 = vst [vmem:[%s7308_s5 + $0x10] sm:$0xff] %v4399_v33  ;;  %5416 = vpow2.f32 %v4255_v35  ;;  %v4568_v0 = vpop.f32.mrb[114].mxu1  ;;  %v4678_v26 = vadd.f32 %v2637_v3, %v7045_v28 }
 0x2a3   :  { %v5399_v39 = vpop.eup %5398  ;;  %3896 = vst.msk [vmem:[%s7308_s5 + $0x18] sm:$0xf] %vm3895_vm2, %v4400_v18  ;;  %v4403_v36 = vpack.c.bf16 %v5397_v55, %v5395_v43  ;;  %5418 = vpow2.f32 %v4260_v6  ;;  %v7106_v58 = vpop.f32.mrb[82].mxu0  ;;  %v7117_v37 = vadd.f32 %v4567_v38, %v2741_v45 }
 0x2a4   :  { %v5401_v62 = vpop.eup %5400  ;;  %v4404_v31 = vpack.c.bf16 %v5399_v39, %v5399_v39  ;;  %5420 = vpow2.f32 %v4261_v46  ;;  %v4569_v29 = vpop.f32.mrb[115].mxu1  ;;  %v4281_v39 = vmul.f32 -1.442695, %v4677_v60  ;;  %v4679_v40 = vadd.f32 %v7106_v58, %v7042_v57 }
 0x2a5   :  { %v5403_v48 = vpop.eup %5402  ;;  %3899 = vst [vmem:[%s7308_s5 + $0x2c] sm:$0xff] %v4403_v36  ;;  %v3231_v8 = vadd.f32 1.0, %v5401_v62  ;;  %5422 = vpow2.f32 %v4262_v63  ;;  %v7111_v42 = vpop.f32.mrb[83].mxu0  ;;  %v4570_v11 = vadd.f32 %v4569_v29, %v4568_v0 }
 0x2a6   :  { %v5405_v15 = vpop.eup %5404  ;;  %3900 = vst.msk [vmem:[%s7308_s5 + $0x34] sm:$0xf] %vm3895_vm2, %v4404_v31  ;;  %v3236_v9 = vadd.f32 1.0, %v5403_v48  ;;  %5424 = vpow2.f32 %v4267_v21  ;;  %v4571_v5 = vpop.f32.mrb[116].mxu1  ;;  %v4282_v31 = vmul.f32 -1.442695, %v4678_v26 }
 0x2a7   :  { %v5407_v17 = vpop.eup %5406  ;;  %5426 = vrcp.f32 %v3231_v8  ;;  %v7121_v12 = vadd.f32 %v4570_v11, %v2744_v52  ;;  %v7126_v34 = vpop.f32.mrb[84].mxu0  ;;  %v4288_v52 = vmul.f32 -1.442695, %v4679_v40 }
 0x2a8   :  { %v5409_v14 = vpop.eup %5408  ;;  %v4407_v50 = vpack.c.bf16 %v5407_v17, %v5405_v15  ;;  %5428 = vrcp.f32 %v3236_v9  ;;  %v4572_v54 = vpop.f32.mrb[117].mxu1 }
 0x2a9   :  { %v5411_v44 = vpop.eup %5410  ;;  %v4408_v1 = vpack.c.bf16 %v5409_v14, %v5409_v14  ;;  %5430 = vpow2.f32 %v4268_v53  ;;  %v7133_v13 = vpop.f32.mrb[85].mxu0  ;;  %v4573_v33 = vadd.f32 %v4572_v54, %v4571_v5  ;;  %v4681_v54 = vadd.f32 %v7126_v34, %v7042_v57 }
 0x2aa   :  { %v5413_v30 = vpop.eup %5412  ;;  %3903 = vst [vmem:[%s7308_s5 + $0x48] sm:$0xff] %v4407_v50  ;;  %5432 = vpow2.f32 %v4269_v25  ;;  %v4574_v61 = vpop.f32.mrb[118].mxu1 }
 0x2ab   :  { %v5415_v27 = vpop.eup %5414  ;;  %3904 = vst.msk [vmem:[%s7308_s5 + $0x50] sm:$0xf] %vm3895_vm2, %v4408_v1  ;;  %v4411_v35 = vpack.c.bf16 %v5413_v30, %v5411_v44  ;;  %5434 = vpow2.f32 %v4274_v32  ;;  %v7137_v46 = vpop.f32.mrb[86].mxu0  ;;  %v7145_v55 = vadd.f32 %v4573_v33, %v2749_v49  ;;  %v4680_v44 = vadd.f32 %v7111_v42, %v7045_v28 }
 0x2ac   :  { %v5417_v6 = vpop.eup %5416  ;;  %v3237_v19 = vadd.f32 1.0, %v5415_v27  ;;  %5436 = vpow2.f32 %v4275_v22  ;;  %v4575_v63 = vpop.f32.mrb[119].mxu1  ;;  %v4682_v49 = vadd.f32 %v7133_v13, %v7045_v28  ;;  %v4683_v13 = vadd.f32 %v7137_v46, %v7042_v57 }
 0x2ad   :  { %v5419_v43 = vpop.eup %5418  ;;  %3907 = vst [vmem:[%s7308_s5 + $0x64] sm:$0xff] %v4411_v35  ;;  %v3238_v18 = vadd.f32 1.0, %v5417_v6  ;;  %5438 = vpow2.f32 %v4276_v4  ;;  %v7143_v2 = vpop.f32.mrb[87].mxu0  ;;  %v4576_v3 = vadd.f32 %v4575_v63, %v4574_v61  ;;  %v4283_v61 = vmul.f32 -1.442695, %v7117_v37 }
 0x2ae   :  { %v5421_v24 = vpop.eup %5420  ;;  %5440 = vrcp.f32 %v3237_v19  ;;  %v3243_v23 = vadd.f32 1.0, %v5419_v43  ;;  %v4577_v20 = vpop.f32.mrb[120].mxu1  ;;  %v4289_v63 = vmul.f32 -1.442695, %v4680_v44  ;;  %v4290_v43 = vmul.f32 -1.442695, %v7121_v12 }
 0x2af   :  { %v5423_v21 = vpop.eup %5422  ;;  %5442 = vrcp.f32 %v3238_v18  ;;  %v3244_v51 = vadd.f32 1.0, %v5421_v24  ;;  %v7151_v48 = vadd.f32 %v4576_v3, %v2752_v47  ;;  %v2655_v59 = vpop.f32.mrb[88].mxu0  ;;  %v4295_v37 = vmul.f32 -1.442695, %v4681_v54 }
 0x2b0   :  { %v5425_v45 = vpop.eup %5424  ;;  %5444 = vrcp.f32 %v3243_v23  ;;  %v3245_v36 = vadd.f32 1.0, %v5423_v21  ;;  %v4578_v41 = vpop.f32.mrb[121].mxu1  ;;  %v7154_v53 = vadd.f32 %v2655_v59, %v7042_v57  ;;  %v4296_v3 = vmul.f32 -1.442695, %v4682_v49 }
 0x2b1   :  { %v5427_v0 = vpop.eup %5426  ;;  %5446 = vrcp.f32 %v3244_v51  ;;  %v3250_v62 = vadd.f32 1.0, %v5425_v45  ;;  %v2657_v15 = vpop.f32.mrb[89].mxu0  ;;  %v4579_v58 = vadd.f32 %v4578_v41, %v4577_v20  ;;  %v4304_v44 = vmul.f32 -1.442695, %v7151_v48 }
 0x2b2   :  { %v5429_v38 = vpop.eup %5428  ;;  %v4412_v29 = vpack.c.bf16 %v5427_v0, %v5427_v0  ;;  %5448 = vrcp.f32 %v3245_v36  ;;  %v4580_v9 = vpop.f32.mrb[122].mxu1  ;;  %v7161_v32 = vadd.f32 %v2657_v15, %v7045_v28 }
 0x2b3   :  { %v5431_v8 = vpop.eup %5430  ;;  %5450 = vrcp.f32 %v3250_v62  ;;  %v2659_v11 = vpop.f32.mrb[90].mxu0  ;;  %v7166_v1 = vadd.f32 %v4579_v58, %v7019_v10 }
 0x2b4   :  { %v5433_v25 = vpop.eup %5432  ;;  %3908 = vst.msk [vmem:[%s7308_s5 + $0x6c] sm:$0xf] %vm3895_vm2, %v4412_v29  ;;  %v3251_v17 = vadd.f32 1.0, %v5431_v8  ;;  %5452 = vpow2.f32 %v4281_v39  ;;  %v4581_v14 = vpop.f32.mrb[123].mxu1  ;;  %v7171_v27 = vadd.f32 %v2659_v11, %v7042_v57 }
 0x2b5   :  { %v5435_v50 = vpop.eup %5434  ;;  %v3252_v22 = vadd.f32 1.0, %v5433_v25  ;;  %5454 = vpow2.f32 %v4282_v31  ;;  %v2661_v4 = vpop.f32.mrb[91].mxu0  ;;  %v4582_v19 = vadd.f32 %v4581_v14, %v4580_v9 }
 0x2b6   :  { %v5437_v5 = vpop.eup %5436  ;;  %5456 = vrcp.f32 %v3251_v17  ;;  %v3257_v30 = vadd.f32 1.0, %v5435_v50  ;;  %v7175_v42 = vadd.f32 %v2661_v4, %v7045_v28  ;;  %v4583_v18 = vpop.f32.mrb[124].mxu1 }
 0x2b7   :  { %v5439_v35 = vpop.eup %5438  ;;  %5458 = vrcp.f32 %v3252_v22  ;;  %v3258_v60 = vadd.f32 1.0, %v5437_v5  ;;  %v7181_v23 = vadd.f32 %v4582_v19, %v7025_v16  ;;  %v2665_v21 = vpop.f32.mrb[92].mxu0 }
 0x2b8   :  { %v5441_v10 = vpop.eup %5440  ;;  %5460 = vrcp.f32 %v3257_v30  ;;  %v3259_v6 = vadd.f32 1.0, %v5439_v35  ;;  %v4584_v47 = vpop.f32.mrb[125].mxu1  ;;  %v7189_v12 = vadd.f32 %v2665_v21, %v7042_v57 }
 0x2b9   :  { %v5443_v33 = vpop.eup %5442  ;;  %v4415_v34 = vpack.c.bf16 %v5441_v10, %v5429_v38  ;;  %5462 = vrcp.f32 %v3258_v60  ;;  %v2667_v39 = vpop.f32.mrb[93].mxu0  ;;  %v4585_v45 = vadd.f32 %v4584_v47, %v4583_v18  ;;  %v4684_v38 = vadd.f32 %v7143_v2, %v7045_v28 }
 0x2ba   :  { %v5445_v26 = vpop.eup %5444  ;;  %v4416_v24 = vpack.c.bf16 %v5443_v33, %v5443_v33  ;;  %5464 = vrcp.f32 %v3259_v6  ;;  %v4586_v36 = vpop.f32.mrb[126].mxu1  ;;  %v7196_v0 = vadd.f32 %v2667_v39, %v7045_v28  ;;  %v4297_v2 = vmul.f32 -1.442695, %v7145_v55 }
 0x2bb   :  { %v5447_v51 = vpop.eup %5446  ;;  %3911 = vst [vmem:[%s7308_s5 + $0x80] sm:$0xff] %v4415_v34  ;;  %5466 = vpow2.f32 %v4283_v61  ;;  %v2669_v62 = vpop.f32.mrb[94].mxu0  ;;  %v7201_v29 = vadd.f32 %v4585_v45, %v7036_v7  ;;  %v4309_v55 = vmul.f32 -1.442695, %v7154_v53  ;;  %v4310_v34 = vmul.f32 -1.442695, %v7161_v32 }
 0x2bc   :  { %v5449_v40 = vpop.eup %5448  ;;  %3912 = vst.msk [vmem:[%s7308_s5 + $0x88] sm:$0xf] %vm3895_vm2, %v4416_v24  ;;  %v4419_v16 = vpack.c.bf16 %v5447_v51, %v5445_v26  ;;  %5468 = vpow2.f32 %v4288_v52  ;;  %v4587_v46 = vpop.f32.mrb[127].mxu1  ;;  %v7207_v8 = vadd.f32 %v2669_v62, %v7042_v57  ;;  %v4302_v52 = vmul.f32 -1.442695, %v4683_v13 }
 0x2bd   :  { %v5451_v31 = vpop.eup %5450  ;;  %v4420_v20 = vpack.c.bf16 %v5449_v40, %v5449_v40  ;;  %5470 = vpow2.f32 %v4289_v63  ;;  %v2671_v59 = vpop.f32.mrb[95].mxu0  ;;  %v4588_v9 = vadd.f32 %v4587_v46, %v4586_v36  ;;  %v4311_v18 = vmul.f32 -1.442695, %v7166_v1 }
 0x2be   :  { %v5453_v41 = vpop.eup %5452  ;;  %3915 = vst [vmem:[%s7308_s5 + $0x9c] sm:$0xff] %v4419_v16  ;;  %5472 = vpow2.f32 %v4290_v43  ;;  %v7210_v15 = vadd.f32 %v2671_v59, %v7045_v28  ;;  %v4303_v28 = vmul.f32 -1.442695, %v4684_v38  ;;  %v4316_v36 = vmul.f32 -1.442695, %v7171_v27 }
 0x2bf   :  { %v5455_v58 = vpop.eup %5454  ;;  %3916 = vst.msk [vmem:[%s7308_s5 + $0xa4] sm:$0xf] %vm3895_vm2, %v4420_v20  ;;  %v3264_v7 = vadd.f32 1.0, %v5453_v41  ;;  %5474 = vpow2.f32 %v4295_v37  ;;  %v7218_v14 = vadd.f32 %v4588_v9, %v7039_v56  ;;  %v4323_v38 = vmul.f32 -1.442695, %v7189_v12 }
 0x2c0   :  { %v5457_v25 = vpop.eup %5456  ;;  %v3265_v17 = vadd.f32 1.0, %v5455_v58  ;;  %5476 = vpow2.f32 %v4296_v3  ;;  %v4317_v3 = vmul.f32 -1.442695, %v7175_v42  ;;  %v4324_v41 = vmul.f32 -1.442695, %v7196_v0 }
 0x2c1   :  { %v5459_v57 = vpop.eup %5458  ;;  %v4423_v11 = vpack.c.bf16 %v5457_v25, %v5451_v31  ;;  %5478 = vrcp.f32 %v3264_v7  ;;  %v4318_v31 = vmul.f32 -1.442695, %v7181_v23  ;;  %v4325_v7 = vmul.f32 -1.442695, %v7201_v29 }
 0x2c2   :  { %v5461_v50 = vpop.eup %5460  ;;  %v4424_v22 = vpack.c.bf16 %v5459_v57, %v5459_v57  ;;  %5480 = vrcp.f32 %v3265_v17  ;;  %v4330_v25 = vmul.f32 -1.442695, %v7207_v8 }
 0x2c3   :  { %v5463_v4 = vpop.eup %5462  ;;  %3919 = vst [vmem:[%s7308_s5 + $0xb8] sm:$0xff] %v4423_v11  ;;  %5482 = vpow2.f32 %v4297_v2 }
 0x2c4   :  { %v5465_v5 = vpop.eup %5464  ;;  %3920 = vst.msk [vmem:[%s7308_s5 + $0xc0] sm:$0xf] %vm3895_vm2, %v4424_v22  ;;  %v4427_v56 = vpack.c.bf16 %v5463_v4, %v5461_v50  ;;  %5484 = vpow2.f32 %v4302_v52  ;;  %v4331_v52 = vmul.f32 -1.442695, %v7210_v15 }
 0x2c5   :  { %v5467_v30 = vpop.eup %5466  ;;  %v4428_v54 = vpack.c.bf16 %v5465_v5, %v5465_v5  ;;  %5486 = vpow2.f32 %v4303_v28  ;;  %v4332_v28 = vmul.f32 -1.442695, %v7218_v14 }
 0x2c6   :  { %v5469_v48 = vpop.eup %5468  ;;  %3923 = vst [vmem:[%s7308_s5 + $0xd4] sm:$0xff] %v4427_v56  ;;  %v3266_v35 = vadd.f32 1.0, %v5467_v30  ;;  %5488 = vpow2.f32 %v4304_v44 }
 0x2c7   :  { %v5471_v60 = vpop.eup %5470  ;;  %3924 = vst.msk [vmem:[%s7308_s5 + $0xdc] sm:$0xf] %vm3895_vm2, %v4428_v54  ;;  %v3271_v53 = vadd.f32 1.0, %v5469_v48  ;;  %5490 = vpow2.f32 %v4309_v55 }
 0x2c8   :  { %v5473_v61 = vpop.eup %5472  ;;  %5492 = vrcp.f32 %v3266_v35  ;;  %v3272_v10 = vadd.f32 1.0, %v5471_v60 }
 0x2c9   :  { %v5475_v6 = vpop.eup %5474  ;;  %5494 = vrcp.f32 %v3271_v53  ;;  %v3273_v49 = vadd.f32 1.0, %v5473_v61 }
 0x2ca   :  { %v5477_v19 = vpop.eup %5476  ;;  %5496 = vrcp.f32 %v3272_v10  ;;  %v3278_v33 = vadd.f32 1.0, %v5475_v6 }
 0x2cb   :  { %v5479_v63 = vpop.eup %5478  ;;  %5498 = vrcp.f32 %v3273_v49  ;;  %v3279_v43 = vadd.f32 1.0, %v5477_v19 }
 0x2cc   :  { %v5481_v26 = vpop.eup %5480  ;;  %5500 = vrcp.f32 %v3278_v33 }
 0x2cd   :  { %v5483_v24 = vpop.eup %5482  ;;  %v4431_v37 = vpack.c.bf16 %v5481_v26, %v5479_v63  ;;  %5502 = vrcp.f32 %v3279_v43 }
 0x2ce   :  { %v5485_v21 = vpop.eup %5484  ;;  %v3280_v47 = vadd.f32 1.0, %v5483_v24  ;;  %5504 = vpow2.f32 %v4310_v34 }
 0x2cf   :  { %v5487_v51 = vpop.eup %5486  ;;  %3927 = vst [vmem:[%s7308_s5 + $0xf0] sm:$0xff] %v4431_v37  ;;  %v3285_v13 = vadd.f32 1.0, %v5485_v21  ;;  %5506 = vpow2.f32 %v4311_v18 }
 0x2d0   :  { %v5489_v32 = vpop.eup %5488  ;;  %5508 = vrcp.f32 %v3280_v47  ;;  %v3286_v39 = vadd.f32 1.0, %v5487_v51 }
 0x2d1   :  { %v5491_v45 = vpop.eup %5490  ;;  %5510 = vrcp.f32 %v3285_v13  ;;  %v3287_v1 = vadd.f32 1.0, %v5489_v32 }
 0x2d2   :  { %v5493_v40 = vpop.eup %5492  ;;  %5512 = vrcp.f32 %v3286_v39  ;;  %v3292_v16 = vadd.f32 1.0, %v5491_v45 }
 0x2d3   :  { %v5495_v62 = vpop.eup %5494  ;;  %v4432_v46 = vpack.c.bf16 %v5493_v40, %v5493_v40  ;;  %5514 = vrcp.f32 %v3287_v1 }
 0x2d4   :  { %v5497_v20 = vpop.eup %5496  ;;  %5516 = vrcp.f32 %v3292_v16 }
 0x2d5   :  { %v5499_v59 = vpop.eup %5498  ;;  %3928 = vst.msk [vmem:[%s7308_s5 + $0xf8] sm:$0xf] %vm3895_vm2, %v4432_v46  ;;  %v4435_v27 = vpack.c.bf16 %v5497_v20, %v5495_v62  ;;  %5518 = vpow2.f32 %v4316_v36 }
 0x2d6   :  { %v5501_v42 = vpop.eup %5500  ;;  %v4436_v58 = vpack.c.bf16 %v5499_v59, %v5499_v59  ;;  %5520 = vpow2.f32 %v4317_v3 }
 0x2d7   :  { %v5503_v23 = vpop.eup %5502  ;;  %3931 = vst [vmem:[%s7308_s5 + $0x10c] sm:$0xff] %v4435_v27  ;;  %5522 = vpow2.f32 %v4318_v31 }
 0x2d8   :  { %v5505_v12 = vpop.eup %5504  ;;  %3932 = vst.msk [vmem:[%s7308_s5 + $0x114] sm:$0xf] %vm3895_vm2, %v4436_v58  ;;  %v4439_v2 = vpack.c.bf16 %v5503_v23, %v5501_v42  ;;  %5524 = vpow2.f32 %v4323_v38 }
 0x2d9   :  { %v5507_v0 = vpop.eup %5506  ;;  %v3293_v9 = vadd.f32 1.0, %v5505_v12  ;;  %5526 = vpow2.f32 %v4324_v41 }
 0x2da   :  { %v5509_v29 = vpop.eup %5508  ;;  %3935 = vst [vmem:[%s7308_s5 + $0x128] sm:$0xff] %v4439_v2  ;;  %v3294_v17 = vadd.f32 1.0, %v5507_v0  ;;  %5528 = vpow2.f32 %v4325_v7 }
 0x2db   :  { %v5511_v57 = vpop.eup %5510  ;;  %v4440_v11 = vpack.c.bf16 %v5509_v29, %v5509_v29  ;;  %5530 = vrcp.f32 %v3293_v9 }
 0x2dc   :  { %v5513_v50 = vpop.eup %5512  ;;  %5532 = vrcp.f32 %v3294_v17 }
 0x2dd   :  { %v5515_v22 = vpop.eup %5514  ;;  %3936 = vst.msk [vmem:[%s7308_s5 + $0x130] sm:$0xf] %vm3895_vm2, %v4440_v11  ;;  %v4443_v8 = vpack.c.bf16 %v5513_v50, %v5511_v57  ;;  %5534 = vpow2.f32 %v4330_v25 }
 0x2de   :  { %v5517_v44 = vpop.eup %5516  ;;  %v4444_v4 = vpack.c.bf16 %v5515_v22, %v5515_v22  ;;  %5536 = vpow2.f32 %v4331_v52 }
 0x2df   :  { %v5519_v55 = vpop.eup %5518  ;;  %3939 = vst [vmem:[%s7308_s5 + $0x144] sm:$0xff] %v4443_v8  ;;  %5538 = vpow2.f32 %v4332_v28 }
 0x2e0   :  { %v5521_v15 = vpop.eup %5520  ;;  %3940 = vst.msk [vmem:[%s7308_s5 + $0x14c] sm:$0xf] %vm3895_vm2, %v4444_v4  ;;  %v3299_v14 = vadd.f32 1.0, %v5519_v55 }
 0x2e1   :  { %v5523_v5 = vpop.eup %5522  ;;  %v3300_v56 = vadd.f32 1.0, %v5521_v15 }
 0x2e2   :  { %v5525_v30 = vpop.eup %5524  ;;  %5540 = vrcp.f32 %v3299_v14  ;;  %v3301_v54 = vadd.f32 1.0, %v5523_v5 }
 0x2e3   :  { %v5527_v48 = vpop.eup %5526  ;;  %5542 = vrcp.f32 %v3300_v56  ;;  %v3306_v35 = vadd.f32 1.0, %v5525_v30 }
 0x2e4   :  { %v5529_v60 = vpop.eup %5528  ;;  %5544 = vrcp.f32 %v3301_v54  ;;  %v3307_v53 = vadd.f32 1.0, %v5527_v48 }
 0x2e5   :  { %v5531_v61 = vpop.eup %5530  ;;  %5546 = vrcp.f32 %v3306_v35  ;;  %v3308_v10 = vadd.f32 1.0, %v5529_v60 }
 0x2e6   :  { %v5533_v6 = vpop.eup %5532  ;;  %v4447_v49 = vpack.c.bf16 %v5531_v61, %v5517_v44  ;;  %5548 = vrcp.f32 %v3307_v53 }
 0x2e7   :  { %v5535_v19 = vpop.eup %5534  ;;  %v4448_v33 = vpack.c.bf16 %v5533_v6, %v5533_v6  ;;  %5550 = vrcp.f32 %v3308_v10 }
 0x2e8   :  { %v5537_v34 = vpop.eup %5536  ;;  %3943 = vst [vmem:[%s7308_s5 + $0x160] sm:$0xff] %v4447_v49  ;;  %v3313_v63 = vadd.f32 1.0, %v5535_v19 }
 0x2e9   :  { %v5539_v43 = vpop.eup %5538  ;;  %3944 = vst.msk [vmem:[%s7308_s5 + $0x168] sm:$0xf] %vm3895_vm2, %v4448_v33  ;;  %v3314_v18 = vadd.f32 1.0, %v5537_v34 }
 0x2ea   :  { %5552 = vrcp.f32 %v3313_v63  ;;  %v3315_v26 = vadd.f32 1.0, %v5539_v43 }
 0x2eb   :  { %5554 = vrcp.f32 %v3314_v18 }
 0x2ec   :  { %v5541_v24 = vpop.eup %5540  ;;  %5556 = vrcp.f32 %v3315_v26 }
 0x2ed   :  { %v5543_v37 = vpop.eup %5542 }
 0x2ee   :  { %v5545_v21 = vpop.eup %5544  ;;  %v4451_v47 = vpack.c.bf16 %v5543_v37, %v5541_v24 }
 0x2ef   :  { %v5547_v51 = vpop.eup %5546  ;;  %v4452_v13 = vpack.c.bf16 %v5545_v21, %v5545_v21 }
 0x2f0   :  { %v5549_v32 = vpop.eup %5548  ;;  %3947 = vst [vmem:[%s7308_s5 + $0x17c] sm:$0xff] %v4451_v47 }
 0x2f1   :  { %v5551_v39 = vpop.eup %5550  ;;  %3948 = vst.msk [vmem:[%s7308_s5 + $0x184] sm:$0xf] %vm3895_vm2, %v4452_v13  ;;  %v4455_v45 = vpack.c.bf16 %v5549_v32, %v5547_v51 }
 0x2f2   :  { %v4456_v1 = vpack.c.bf16 %v5551_v39, %v5551_v39 }
 0x2f3   :  { %3951 = vst [vmem:[%s7308_s5 + $0x198] sm:$0xff] %v4455_v45 }
 0x2f4   :  { %v5553_v36 = vpop.eup %5552  ;;  %3952 = vst.msk [vmem:[%s7308_s5 + $0x1a0] sm:$0xf] %vm3895_vm2, %v4456_v1 }
 0x2f5   :  { %v5555_v40 = vpop.eup %5554 }
 0x2f6   :  { %v5557_v16 = vpop.eup %5556  ;;  %v4459_v3 = vpack.c.bf16 %v5555_v40, %v5553_v36 }
 0x2f7   :  { %v4460_v62 = vpack.c.bf16 %v5557_v16, %v5557_v16 }
 0x2f8   :  { %3955 = vst [vmem:[%s7308_s5 + $0x1b4] sm:$0xff] %v4459_v3 }
 0x2f9   :  { %3956 = vst.msk [vmem:[%s7308_s5 + $0x1bc] sm:$0xf] %vm3895_vm2, %v4460_v62 }

</bundles_post_ra>
